<compile_context>
chip_gen: v7x
topology: tpu7x:2x2x1
jax: 0.10.0
libtpu: 0.0.40
codegen_flags: <defaults>
</compile_context>

<pallas_src>
import functools
import numpy as np
import jax
import jax.numpy as jnp
from jax.experimental import pallas as pl
from jax.experimental.pallas import tpu as pltpu


# ------------------------------ fused Pallas kernel ------------------------------

def _fused_forward_kernel(xin_ref, adj_ref, w_ref, o_ref, *,
                          n0, in_total, p_dim, c0, c1,
                          num_relations, num_labels, lay):
    """Entire BipartiteRGAT forward; all operands and intermediates in VMEM.

    xin  : [N, in0+in1+1]  block-diagonal packed per-omic features, last lane
                           column holds the per-target total in-degree.
    adj  : [R, N, N]       adj[r, i, j] = 1 iff edge j -> i of relation r.
    w    : [rows, 48]      one packed parameter slab; every section starts at
                           an 8-row (sublane-tile) aligned offset `lay[...]`:
                           proj_w, sl_w, rg1_w, rg1_qk, rg2_w, rg2_qk,
                           lin1_w, lin2_w, bias-block (8 rows).
    o    : [n0, num_labels]
    """
    f32 = jnp.float32
    R = num_relations
    # exp(y)-1 (not expm1) to stay on guaranteed Mosaic lowerings; precision
    # loss near 0 is far below the test tolerance.
    elu = lambda v: jnp.where(v > 0, v, jnp.exp(v) - 1.0)

    n = xin_ref.shape[0]
    xin = xin_ref[:, :in_total]                       # [N, in0+in1]
    deg = xin_ref[:, in_total:in_total + 1]           # [N, 1] precomputed in-degree

    # 8-row bias block: one aligned load, rows indexed statically below.
    # rows: 0/1 proj_b(type0/1), 2/3 sl_b(type0/1), 4 rgat1_b, 5 rgat2_b,
    #       6 lin1_b, 7 lin2_b
    bias = w_ref[lay["bias"]:lay["bias"] + 8, :]

    # ---- per-omic projection + ELU: ONE block-diagonal matmul ----
    proj_w = w_ref[lay["proj_w"]:lay["proj_w"] + in_total, :p_dim]
    row_p = jax.lax.broadcasted_iota(jnp.int32, (n, p_dim), 0)
    proj_b = jnp.where(row_p < n0,
                       jnp.broadcast_to(bias[0:1, :p_dim], (n, p_dim)),
                       jnp.broadcast_to(bias[1:2, :p_dim], (n, p_dim)))
    x_proj = elu(jnp.dot(xin, proj_w, preferred_element_type=f32) + proj_b)

    # ---- both per-type self-loop linears in ONE matmul, then row-type select ----
    sl_w = w_ref[lay["sl_w"]:lay["sl_w"] + p_dim, :2 * c0]
    d_both = jnp.dot(x_proj, sl_w, preferred_element_type=f32)     # [N, 2*C0]
    row_c = jax.lax.broadcasted_iota(jnp.int32, (n, c0), 0)
    sl_b = jnp.where(row_c < n0,
                     jnp.broadcast_to(bias[2:3, :c0], (n, c0)),
                     jnp.broadcast_to(bias[3:4, :c0], (n, c0)))
    delta = jnp.where(row_c < n0, d_both[:, :c0], d_both[:, c0:]) + sl_b

    def rgat(x, w_off, din, qk_off, b_row, C):
        """RGATConv: heads=1, mod='f-scaled', additive self-attention,
        across-relation softmax, sum aggregation, bias."""
        # all per-relation transforms in ONE matmul; z[:, r*C:(r+1)*C] = x @ w_r
        z = jnp.dot(x, w_ref[w_off:w_off + din, :R * C],
                    preferred_element_type=f32)                    # [N, R*C]
        # all q_r / k_r attention projections in ONE matmul against block-diag
        a = jnp.dot(z, w_ref[qk_off:qk_off + R * C, :2 * R],
                    preferred_element_type=f32)                    # [N, 2R]
        a_q = a[:, :R]                                             # [N, R]
        # ONE [N,R]->[R,N] transpose per layer (was R per-column transposes)
        a_kT = a[:, R:2 * R].T                                     # [R, N]
        neg = f32(-1e30)

        def logit(r):
            l = a_q[:, r:r + 1] + a_kT[r:r + 1, :]                 # [N, N]
            return jnp.where(l > 0, l, 0.2 * l)                    # leaky_relu(0.2)

        # pass 1: masked per-target max over (relation, source); masks derived
        # lazily from adj_ref[r] (nothing big kept live across passes).
        m = jnp.full((n, 1), neg, dtype=f32)
        for r in range(R):
            lm = jnp.where(adj_ref[r] > 0, logit(r), neg)
            m = jnp.maximum(m, jnp.max(lm, axis=1, keepdims=True))
        # rows with zero in-degree keep the -1e30 sentinel -> clamp to 0 so exp
        # stays finite; their s stays 0 and the output is bias-only (matches ref).
        m_safe = jnp.where(m > 0.5 * neg, m, 0.0)

        # pass 2: softmax numerator/denominator + weighted-sum aggregation.
        # Logits recomputed (cheap VPU) instead of kept live from pass 1.
        s = jnp.zeros((n, 1), dtype=f32)
        acc = jnp.zeros((n, C), dtype=f32)
        for r in range(R):
            # KEEP the where-select form: unmasked logits may exceed the masked
            # row max (exp -> large but finite); exp(...)*mask would emit NaNs.
            e = jnp.where(adj_ref[r] > 0, jnp.exp(logit(r) - m_safe), 0.0)
            s = s + jnp.sum(e, axis=1, keepdims=True)
            acc = acc + jnp.dot(e, z[:, r * C:(r + 1) * C],
                                preferred_element_type=f32)
        # 'f-scaled': softmax * in-degree; reciprocal goes to the idle EUP slot.
        scale = jnp.where(s > 0, deg * pl.reciprocal(s, approx=True), 0.0)
        return acc * scale + bias[b_row:b_row + 1, :C]

    x = elu(rgat(x_proj, lay["rg1_w"], p_dim, lay["rg1_qk"], 4, c0) + delta)
    # the module re-applies self_loops1 on the projected features before layer 2
    x = elu(rgat(x, lay["rg2_w"], c0, lay["rg2_qk"], 5, c1) + delta)

    # classifier head on node-type-0 rows only; dropout(p=0.2) = identity at inference
    h = elu(jnp.dot(x[:n0, :], w_ref[lay["lin1_w"]:lay["lin1_w"] + c1, :c1],
                    preferred_element_type=f32) + bias[6:7, :c1])
    o_ref[...] = (jnp.dot(h, w_ref[lay["lin2_w"]:lay["lin2_w"] + c1, :num_labels],
                          preferred_element_type=f32) + bias[7:8, :num_labels])


# ------------------------- one-time parameter packing -------------------------

def _round8(r):
    return (r + 7) // 8 * 8


def _build_layout(in_total, p, c0, c1, R, nl):
    """Row offsets (all 8-aligned -> sublane-tile aligned slices) and slab width."""
    width = max(p, 2 * c0, R * c0, R * c1, 2 * R, c1, nl)
    lay, off = {}, 0
    for name, rows in (("proj_w", in_total), ("sl_w", p),
                       ("rg1_w", p), ("rg1_qk", R * c0),
                       ("rg2_w", c0), ("rg2_qk", R * c1),
                       ("lin1_w", c1), ("lin2_w", c1), ("bias", 8)):
        lay[name] = off
        off += _round8(rows)
    lay["rows"], lay["width"] = off, width
    return lay


def _pack_qk(q, k, R):
    """q, k: [C, 1] -> block-diagonal [R*C, 2R] (cols r: q_r, R+r: k_r)."""
    eye = np.eye(R, dtype=np.float32)
    return np.concatenate([np.kron(eye, np.asarray(q, np.float32)),
                           np.kron(eye, np.asarray(k, np.float32))], axis=1)


def pack_params(params):
    """Pack ALL weights/biases into one [rows, width] f32 slab (runs ONCE,
    outside the jitted per-call path)."""
    in0 = params["proj_w"][0].shape[0]
    in1 = params["proj_w"][1].shape[0]
    p = params["proj_w"][0].shape[1]
    R, _, c0 = params["rgat1_w"].shape
    c1 = params["rgat2_w"].shape[2]
    nl = params["lin2_w"].shape[1]
    lay = _build_layout(in0 + in1, p, c0, c1, R, nl)
    slab = np.zeros((lay["rows"], lay["width"]), np.float32)

    def put(name, arr):
        arr = np.asarray(arr, np.float32)
        slab[lay[name]:lay[name] + arr.shape[0], :arr.shape[1]] = arr

    put("proj_w", np.concatenate([np.asarray(params["proj_w"][0]),
                                  np.asarray(params["proj_w"][1])], axis=0))
    put("sl_w", np.concatenate([np.asarray(params["sl1_w"][0]),
                                np.asarray(params["sl1_w"][1])], axis=1))
    put("rg1_w", np.transpose(np.asarray(params["rgat1_w"]), (1, 0, 2)).reshape(p, R * c0))
    put("rg1_qk", _pack_qk(params["rgat1_q"], params["rgat1_k"], R))
    put("rg2_w", np.transpose(np.asarray(params["rgat2_w"]), (1, 0, 2)).reshape(c0, R * c1))
    put("rg2_qk", _pack_qk(params["rgat2_q"], params["rgat2_k"], R))
    put("lin1_w", params["lin1_w"])
    put("lin2_w", params["lin2_w"])

    ob = lay["bias"]
    slab[ob + 0, :p] = np.asarray(params["proj_b"][0])
    slab[ob + 1, :p] = np.asarray(params["proj_b"][1])
    slab[ob + 2, :c0] = np.asarray(params["sl1_b"][0])
    slab[ob + 3, :c0] = np.asarray(params["sl1_b"][1])
    slab[ob + 4, :c0] = np.asarray(params["rgat1_b"])
    slab[ob + 5, :c1] = np.asarray(params["rgat2_b"])
    slab[ob + 6, :c1] = np.asarray(params["lin1_b"])
    slab[ob + 7, :nl] = np.asarray(params["lin2_b"])

    meta = dict(p_dim=p, c0=c0, c1=c1, num_relations=R, num_labels=nl)
    return jnp.asarray(slab), lay, meta


# ------------------------------- forward builder -------------------------------

def make_forward(params):
    """Pack parameters once and return a jitted forward(omic_feats, adj).
    Per-call jitted work = xin assembly (+deg column) and ONE fused pallas_call
    with 3 input DMAs."""
    wslab, lay, meta = pack_params(params)
    R = meta["num_relations"]
    p, c0, c1, nl = meta["p_dim"], meta["c0"], meta["c1"], meta["num_labels"]

    @jax.jit
    def forward(omic_feats, adj):
        n0, in0 = omic_feats[0].shape
        n1, in1 = omic_feats[1].shape
        n = n0 + n1
        in_total = in0 + in1

        # per-call packing kept minimal: block-diag features + in-degree column.
        deg = jnp.sum(adj, axis=(0, 2))                            # [N]
        xin = jnp.zeros((n, in_total + 1), jnp.float32)
        xin = xin.at[:n0, :in0].set(omic_feats[0])
        xin = xin.at[n0:, in0:in_total].set(omic_feats[1])
        xin = xin.at[:, in_total].set(deg)

        kern = functools.partial(
            _fused_forward_kernel,
            n0=n0, in_total=in_total, p_dim=p, c0=c0, c1=c1,
            num_relations=R, num_labels=nl, lay=lay)

        # Advisory cost hint so XLA overlaps surrounding ops with this cheap call.
        mm_flops = 2 * n * (in_total * p + p * 2 * c0
                            + p * R * c0 + R * c0 * 2 * R + n * R * c0
                            + c0 * R * c1 + R * c1 * 2 * R + n * R * c1) \
                   + 2 * n0 * (c1 * c1 + c1 * nl)
        transc = 2 * R * n * n + n * (p + 2 * c0 + c1) + n0 * c1
        bytes_acc = 4 * (n * (in_total + 1) + adj.size + wslab.size + n0 * nl)

        vmem = pl.BlockSpec(memory_space=pltpu.MemorySpace.VMEM)
        # TODO(synk): for batched multi-graph inference add a leading grid axis
        #             with dimension_semantics=("parallel", ...) (2x TC on v7x).
        return pl.pallas_call(
            kern,
            out_shape=jax.ShapeDtypeStruct((n0, nl), jnp.float32),
            in_specs=[vmem, vmem, vmem],
            out_specs=vmem,
            compiler_params=pltpu.CompilerParams(vmem_limit_bytes=8 * 1024 * 1024),
            cost_estimate=pl.CostEstimate(flops=int(mm_flops),
                                          transcendentals=int(transc),
                                          bytes_accessed=int(bytes_acc)),
        )(xin, adj, wslab)

    return forward


# ------------------------------- model config -------------------------------

INPUT_SIZES = [20, 12]     # per-omic feature sizes
N_NODES = [12, 8]          # nodes per omic view (type-0 nodes feed the classifier head)
PROJ_DIM = 16
NUM_RELATIONS = 3
NUM_HEADS = 1              # heads=1 keeps the module's self-loop adds shape-consistent
HIDDEN = [16, 16]          # hidden_channels (equal: forward reuses self_loops1)
NUM_LABELS = 4


def init_params(key):
    ks = iter(jax.random.split(key, 32))

    def dense(shape, fan_in):
        return jax.random.normal(next(ks), shape, jnp.float32) / np.sqrt(fan_in)

    h0, h1 = HIDDEN
    p = {}
    p["proj_w"] = [dense((INPUT_SIZES[i], PROJ_DIM), INPUT_SIZES[i]) for i in range(2)]
    p["proj_b"] = [dense((PROJ_DIM,), 4.0) for _ in range(2)]
    p["rgat1_w"] = dense((NUM_RELATIONS, PROJ_DIM, NUM_HEADS * h0), PROJ_DIM)
    p["rgat1_q"] = dense((NUM_HEADS * h0, NUM_HEADS), h0)
    p["rgat1_k"] = dense((NUM_HEADS * h0, NUM_HEADS), h0)
    p["rgat1_b"] = dense((NUM_HEADS * h0,), 4.0)
    p["sl1_w"] = [dense((PROJ_DIM, h0), PROJ_DIM) for _ in range(2)]
    p["sl1_b"] = [dense((h0,), 4.0) for _ in range(2)]
    p["rgat2_w"] = dense((NUM_RELATIONS, NUM_HEADS * h0, h1), NUM_HEADS * h0)
    p["rgat2_q"] = dense((h1, 1), h1)
    p["rgat2_k"] = dense((h1, 1), h1)
    p["rgat2_b"] = dense((h1,), 4.0)
    p["lin1_w"] = dense((h1, h1), h1)
    p["lin1_b"] = dense((h1,), 4.0)
    p["lin2_w"] = dense((h1, NUM_LABELS), h1)
    p["lin2_b"] = dense((NUM_LABELS,), 4.0)
    return p


# ----------------------------- pure-JAX reference ----------------------------

def _rgat_ref(x, w, q, k, b, adj, heads, C):
    R, N = w.shape[0], x.shape[0]
    deg = adj.sum(axis=(0, 2))
    Z = jnp.einsum("nd,rdo->rno", x, w)
    Q = jnp.einsum("rno,oh->rnh", Z, q)
    K = jnp.einsum("rno,oh->rnh", Z, k)
    L = Q[:, :, None, :] + K[:, None, :, :]               # [R, i, j, H]
    L = jnp.where(L > 0, L, 0.2 * L)
    mask = (adj > 0)[..., None]
    neg = -1e30
    m = jnp.max(jnp.where(mask, L, neg), axis=(0, 2))     # [N, H]
    m = jnp.where(m > 0.5 * neg, m, 0.0)
    e = jnp.where(mask, jnp.exp(L - m[None, :, None, :]), 0.0)
    s = e.sum(axis=(0, 2))                                # [N, H]
    Zh = Z.reshape(R, N, heads, C)
    num = jnp.einsum("rijh,rjhc->ihc", e, Zh)             # [N, H, C]
    scale = jnp.where(s > 0, deg[:, None] / s, 0.0)
    return (num * scale[:, :, None]).reshape(N, heads * C) + b


def forward_ref(params, omic_feats, adj):
    elu = lambda v: jnp.where(v > 0, v, jnp.exp(v) - 1.0)
    n0 = omic_feats[0].shape[0]
    h0, h1 = HIDDEN
    xs = [elu(omic_feats[i] @ params["proj_w"][i] + params["proj_b"][i])
          for i in range(2)]
    x_proj = jnp.concatenate(xs, axis=0)
    x = _rgat_ref(x_proj, params["rgat1_w"], params["rgat1_q"], params["rgat1_k"],
                  params["rgat1_b"], adj, NUM_HEADS, h0)
    delta = jnp.concatenate(
        [xs[i] @ params["sl1_w"][i] + params["sl1_b"][i] for i in range(2)], axis=0)
    x = elu(x + delta)
    x = _rgat_ref(x, params["rgat2_w"], params["rgat2_q"], params["rgat2_k"],
                  params["rgat2_b"], adj, 1, h1)
    x = elu(x + delta)
    h = elu(x[:n0] @ params["lin1_w"] + params["lin1_b"])
    return h @ params["lin2_w"] + params["lin2_b"]


# ------------------------------------ main -----------------------------------

if __name__ == "__main__":
    key = jax.random.PRNGKey(0)
    k_par, k_x0, k_x1, k_adj = jax.random.split(key, 4)
    params = init_params(k_par)

    omic_feats = [
        jax.random.normal(k_x0, (N_NODES[0], INPUT_SIZES[0]), jnp.float32),
        jax.random.normal(k_x1, (N_NODES[1], INPUT_SIZES[1]), jnp.float32),
    ]

    n_total = sum(N_NODES)
    node_type = jnp.array([0] * N_NODES[0] + [1] * N_NODES[1])
    is0 = node_type == 0
    rand = jax.random.bernoulli(k_adj, 0.35, (NUM_RELATIONS, n_total, n_total))
    allow = jnp.stack([
        is0[:, None] & (~is0)[None, :],                                   # rel0: omic1 -> omic0
        (~is0)[:, None] & is0[None, :],                                   # rel1: omic0 -> omic1
        is0[:, None] & is0[None, :] & (~jnp.eye(n_total, dtype=bool)),    # rel2: omic0 similarity
    ])
    adj = (rand & allow).astype(jnp.float32)   # adj[r, i, j] = 1 iff edge j -> i, relation r

    forward = make_forward(params)             # one-time parameter packing + jit
    out = forward(omic_feats, adj)
    out = jax.block_until_ready(out)
    assert out.shape == (N_NODES[0], NUM_LABELS)

    ref = forward_ref(params, omic_feats, adj)
    np.testing.assert_allclose(np.asarray(out), np.asarray(ref), rtol=2e-2, atol=2e-2)

    print("KERNEL_OK")
</pallas_src>

<mosaic_0001>
module attributes {stable_mosaic.version = 11 : i64} {
  func.func @_fused_forward_kernel(%arg0: memref<20x33xf32, #tpu.memory_space<vmem>>, %arg1: memref<3x20x20xf32, #tpu.memory_space<vmem>>, %arg2: memref<216x48xf32, #tpu.memory_space<vmem>>, %arg3: memref<12x4xf32, #tpu.memory_space<vmem>>) attributes {dimension_semantics = [], scalar_prefetch = 0 : i64, scratch_operands = 0 : i64, tpu.core_type = #tpu.core_type<tc>} {
    %c0 = arith.constant 0 : index
    %c0_0 = arith.constant 0 : index
    %0 = vector.load %arg0[%c0, %c0_0] : memref<20x33xf32, #tpu.memory_space<vmem>>, vector<20x32xf32>
    %c0_1 = arith.constant 0 : index
    %c32 = arith.constant 32 : index
    %1 = vector.load %arg0[%c0_1, %c32] : memref<20x33xf32, #tpu.memory_space<vmem>>, vector<20x1xf32>
    %c208 = arith.constant 208 : index
    %c0_2 = arith.constant 0 : index
    %2 = vector.load %arg2[%c208, %c0_2] : memref<216x48xf32, #tpu.memory_space<vmem>>, vector<8x48xf32>
    %c0_3 = arith.constant 0 : index
    %c0_4 = arith.constant 0 : index
    %3 = vector.load %arg2[%c0_3, %c0_4] : memref<216x48xf32, #tpu.memory_space<vmem>>, vector<32x16xf32>
    %4 = tpu.iota {dimensions = array<i32: 0>} : vector<20x16xi32>
    %c12_i32 = arith.constant 12 : i32
    %5 = vector.broadcast %c12_i32 : i32 to vector<20x16xi32>
    %6 = arith.cmpi slt, %4, %5 : vector<20x16xi32>
    %7 = vector.extract_strided_slice %2 {offsets = [0, 0], sizes = [1, 16], strides = [1, 1]} : vector<8x48xf32> to vector<1x16xf32>
    %8 = vector.shape_cast %7 : vector<1x16xf32> to vector<1x16xf32>
    %9 = vector.broadcast %8 : vector<1x16xf32> to vector<20x16xf32>
    %10 = vector.extract_strided_slice %2 {offsets = [1, 0], sizes = [1, 16], strides = [1, 1]} : vector<8x48xf32> to vector<1x16xf32>
    %11 = vector.shape_cast %10 : vector<1x16xf32> to vector<1x16xf32>
    %12 = vector.broadcast %11 : vector<1x16xf32> to vector<20x16xf32>
    %13 = arith.select %6, %9, %12 : vector<20x16xi1>, vector<20x16xf32>
    %cst = arith.constant dense<0.000000e+00> : vector<20x16xf32>
    %14 = tpu.matmul %0, %3, %cst {dimension_numbers = #tpu.dot_dimension_numbers<[1], [0], [0], [1], [0, 0, 1, 1], [], []>} : vector<20x32xf32>, vector<32x16xf32>, vector<20x16xf32> -> vector<20x16xf32>
    %15 = arith.addf %14, %13 : vector<20x16xf32>
    %cst_5 = arith.constant 0.000000e+00 : f32
    %16 = vector.broadcast %cst_5 : f32 to vector<20x16xf32>
    %17 = arith.cmpf ogt, %15, %16 : vector<20x16xf32>
    %18 = math.exp %15 : vector<20x16xf32>
    %cst_6 = arith.constant 1.000000e+00 : f32
    %19 = vector.broadcast %cst_6 : f32 to vector<20x16xf32>
    %20 = arith.subf %18, %19 : vector<20x16xf32>
    %21 = arith.select %17, %15, %20 : vector<20x16xi1>, vector<20x16xf32>
    %c32_7 = arith.constant 32 : index
    %c0_8 = arith.constant 0 : index
    %22 = vector.load %arg2[%c32_7, %c0_8] : memref<216x48xf32, #tpu.memory_space<vmem>>, vector<16x32xf32>
    %cst_9 = arith.constant dense<0.000000e+00> : vector<20x32xf32>
    %23 = tpu.matmul %21, %22, %cst_9 {dimension_numbers = #tpu.dot_dimension_numbers<[1], [0], [0], [1], [0, 0, 1, 1], [], []>} : vector<20x16xf32>, vector<16x32xf32>, vector<20x32xf32> -> vector<20x32xf32>
    %24 = tpu.iota {dimensions = array<i32: 0>} : vector<20x16xi32>
    %c12_i32_10 = arith.constant 12 : i32
    %25 = vector.broadcast %c12_i32_10 : i32 to vector<20x16xi32>
    %26 = arith.cmpi slt, %24, %25 : vector<20x16xi32>
    %27 = vector.extract_strided_slice %2 {offsets = [2, 0], sizes = [1, 16], strides = [1, 1]} : vector<8x48xf32> to vector<1x16xf32>
    %28 = vector.shape_cast %27 : vector<1x16xf32> to vector<1x16xf32>
    %29 = vector.broadcast %28 : vector<1x16xf32> to vector<20x16xf32>
    %30 = vector.extract_strided_slice %2 {offsets = [3, 0], sizes = [1, 16], strides = [1, 1]} : vector<8x48xf32> to vector<1x16xf32>
    %31 = vector.shape_cast %30 : vector<1x16xf32> to vector<1x16xf32>
    %32 = vector.broadcast %31 : vector<1x16xf32> to vector<20x16xf32>
    %33 = arith.select %26, %29, %32 : vector<20x16xi1>, vector<20x16xf32>
    %c12_i32_11 = arith.constant 12 : i32
    %34 = vector.broadcast %c12_i32_11 : i32 to vector<20x16xi32>
    %35 = arith.cmpi slt, %24, %34 : vector<20x16xi32>
    %36 = vector.extract_strided_slice %23 {offsets = [0, 0], sizes = [20, 16], strides = [1, 1]} : vector<20x32xf32> to vector<20x16xf32>
    %37 = vector.extract_strided_slice %23 {offsets = [0, 16], sizes = [20, 16], strides = [1, 1]} : vector<20x32xf32> to vector<20x16xf32>
    %38 = arith.select %35, %36, %37 : vector<20x16xi1>, vector<20x16xf32>
    %39 = arith.addf %38, %33 : vector<20x16xf32>
    %c48 = arith.constant 48 : index
    %c0_12 = arith.constant 0 : index
    %40 = vector.load %arg2[%c48, %c0_12] : memref<216x48xf32, #tpu.memory_space<vmem>>, vector<16x48xf32>
    %cst_13 = arith.constant dense<0.000000e+00> : vector<20x48xf32>
    %41 = tpu.matmul %21, %40, %cst_13 {dimension_numbers = #tpu.dot_dimension_numbers<[1], [0], [0], [1], [0, 0, 1, 1], [], []>} : vector<20x16xf32>, vector<16x48xf32>, vector<20x48xf32> -> vector<20x48xf32>
    %c64 = arith.constant 64 : index
    %c0_14 = arith.constant 0 : index
    %42 = vector.load %arg2[%c64, %c0_14] : memref<216x48xf32, #tpu.memory_space<vmem>>, vector<48x6xf32>
    %cst_15 = arith.constant dense<0.000000e+00> : vector<20x6xf32>
    %43 = tpu.matmul %41, %42, %cst_15 {dimension_numbers = #tpu.dot_dimension_numbers<[1], [0], [0], [1], [0, 0, 1, 1], [], []>} : vector<20x48xf32>, vector<48x6xf32>, vector<20x6xf32> -> vector<20x6xf32>
    %44 = vector.extract_strided_slice %43 {offsets = [0, 0], sizes = [20, 3], strides = [1, 1]} : vector<20x6xf32> to vector<20x3xf32>
    %45 = vector.extract_strided_slice %43 {offsets = [0, 3], sizes = [20, 3], strides = [1, 1]} : vector<20x6xf32> to vector<20x3xf32>
    %46 = tpu.transpose %45, [1, 0] : vector<20x3xf32> -> vector<3x20xf32>
    %cst_16 = arith.constant -1.000000e+30 : f32
    %47 = vector.broadcast %cst_16 : f32 to vector<20x1xf32>
    %c0_17 = arith.constant 0 : index
    %c0_18 = arith.constant 0 : index
    %c0_19 = arith.constant 0 : index
    %48 = vector.load %arg1[%c0_17, %c0_18, %c0_19] : memref<3x20x20xf32, #tpu.memory_space<vmem>>, vector<1x20x20xf32>
    %49 = vector.shape_cast %48 : vector<1x20x20xf32> to vector<20x20xf32>
    %cst_20 = arith.constant 0.000000e+00 : f32
    %50 = vector.broadcast %cst_20 : f32 to vector<20x20xf32>
    %51 = arith.cmpf ogt, %49, %50 : vector<20x20xf32>
    %52 = vector.extract_strided_slice %44 {offsets = [0, 0], sizes = [20, 1], strides = [1, 1]} : vector<20x3xf32> to vector<20x1xf32>
    %53 = vector.extract_strided_slice %46 {offsets = [0, 0], sizes = [1, 20], strides = [1, 1]} : vector<3x20xf32> to vector<1x20xf32>
    %54 = vector.broadcast %52 : vector<20x1xf32> to vector<20x20xf32>
    %55 = vector.broadcast %53 : vector<1x20xf32> to vector<20x20xf32>
    %56 = arith.addf %54, %55 : vector<20x20xf32>
    %cst_21 = arith.constant 0.000000e+00 : f32
    %57 = vector.broadcast %cst_21 : f32 to vector<20x20xf32>
    %58 = arith.cmpf ogt, %56, %57 : vector<20x20xf32>
    %cst_22 = arith.constant 2.000000e-01 : f32
    %59 = vector.broadcast %cst_22 : f32 to vector<20x20xf32>
    %60 = arith.mulf %59, %56 : vector<20x20xf32>
    %61 = arith.select %58, %56, %60 : vector<20x20xi1>, vector<20x20xf32>
    %cst_23 = arith.constant -1.000000e+30 : f32
    %62 = vector.broadcast %cst_23 : f32 to vector<20x20xf32>
    %63 = arith.select %51, %61, %62 : vector<20x20xi1>, vector<20x20xf32>
    %cst_24 = arith.constant dense<0xFF800000> : vector<20xf32>
    %64 = vector.multi_reduction <maximumf>, %63, %cst_24 [1] : vector<20x20xf32> to vector<20xf32>
    %65 = vector.shape_cast %64 : vector<20xf32> to vector<20x1xf32>
    %66 = arith.maximumf %47, %65 : vector<20x1xf32>
    %c1 = arith.constant 1 : index
    %c0_25 = arith.constant 0 : index
    %c0_26 = arith.constant 0 : index
    %67 = vector.load %arg1[%c1, %c0_25, %c0_26] : memref<3x20x20xf32, #tpu.memory_space<vmem>>, vector<1x20x20xf32>
    %68 = vector.shape_cast %67 : vector<1x20x20xf32> to vector<20x20xf32>
    %cst_27 = arith.constant 0.000000e+00 : f32
    %69 = vector.broadcast %cst_27 : f32 to vector<20x20xf32>
    %70 = arith.cmpf ogt, %68, %69 : vector<20x20xf32>
    %71 = vector.extract_strided_slice %44 {offsets = [0, 1], sizes = [20, 1], strides = [1, 1]} : vector<20x3xf32> to vector<20x1xf32>
    %72 = vector.extract_strided_slice %46 {offsets = [1, 0], sizes = [1, 20], strides = [1, 1]} : vector<3x20xf32> to vector<1x20xf32>
    %73 = vector.broadcast %71 : vector<20x1xf32> to vector<20x20xf32>
    %74 = vector.broadcast %72 : vector<1x20xf32> to vector<20x20xf32>
    %75 = arith.addf %73, %74 : vector<20x20xf32>
    %cst_28 = arith.constant 0.000000e+00 : f32
    %76 = vector.broadcast %cst_28 : f32 to vector<20x20xf32>
    %77 = arith.cmpf ogt, %75, %76 : vector<20x20xf32>
    %cst_29 = arith.constant 2.000000e-01 : f32
    %78 = vector.broadcast %cst_29 : f32 to vector<20x20xf32>
    %79 = arith.mulf %78, %75 : vector<20x20xf32>
    %80 = arith.select %77, %75, %79 : vector<20x20xi1>, vector<20x20xf32>
    %cst_30 = arith.constant -1.000000e+30 : f32
    %81 = vector.broadcast %cst_30 : f32 to vector<20x20xf32>
    %82 = arith.select %70, %80, %81 : vector<20x20xi1>, vector<20x20xf32>
    %cst_31 = arith.constant dense<0xFF800000> : vector<20xf32>
    %83 = vector.multi_reduction <maximumf>, %82, %cst_31 [1] : vector<20x20xf32> to vector<20xf32>
    %84 = vector.shape_cast %83 : vector<20xf32> to vector<20x1xf32>
    %85 = arith.maximumf %66, %84 : vector<20x1xf32>
    %c2 = arith.constant 2 : index
    %c0_32 = arith.constant 0 : index
    %c0_33 = arith.constant 0 : index
    %86 = vector.load %arg1[%c2, %c0_32, %c0_33] : memref<3x20x20xf32, #tpu.memory_space<vmem>>, vector<1x20x20xf32>
    %87 = vector.shape_cast %86 : vector<1x20x20xf32> to vector<20x20xf32>
    %cst_34 = arith.constant 0.000000e+00 : f32
    %88 = vector.broadcast %cst_34 : f32 to vector<20x20xf32>
    %89 = arith.cmpf ogt, %87, %88 : vector<20x20xf32>
    %90 = vector.extract_strided_slice %44 {offsets = [0, 2], sizes = [20, 1], strides = [1, 1]} : vector<20x3xf32> to vector<20x1xf32>
    %91 = vector.extract_strided_slice %46 {offsets = [2, 0], sizes = [1, 20], strides = [1, 1]} : vector<3x20xf32> to vector<1x20xf32>
    %92 = vector.broadcast %90 : vector<20x1xf32> to vector<20x20xf32>
    %93 = vector.broadcast %91 : vector<1x20xf32> to vector<20x20xf32>
    %94 = arith.addf %92, %93 : vector<20x20xf32>
    %cst_35 = arith.constant 0.000000e+00 : f32
    %95 = vector.broadcast %cst_35 : f32 to vector<20x20xf32>
    %96 = arith.cmpf ogt, %94, %95 : vector<20x20xf32>
    %cst_36 = arith.constant 2.000000e-01 : f32
    %97 = vector.broadcast %cst_36 : f32 to vector<20x20xf32>
    %98 = arith.mulf %97, %94 : vector<20x20xf32>
    %99 = arith.select %96, %94, %98 : vector<20x20xi1>, vector<20x20xf32>
    %cst_37 = arith.constant -1.000000e+30 : f32
    %100 = vector.broadcast %cst_37 : f32 to vector<20x20xf32>
    %101 = arith.select %89, %99, %100 : vector<20x20xi1>, vector<20x20xf32>
    %cst_38 = arith.constant dense<0xFF800000> : vector<20xf32>
    %102 = vector.multi_reduction <maximumf>, %101, %cst_38 [1] : vector<20x20xf32> to vector<20xf32>
    %103 = vector.shape_cast %102 : vector<20xf32> to vector<20x1xf32>
    %104 = arith.maximumf %85, %103 : vector<20x1xf32>
    %cst_39 = arith.constant 5.000000e-01 : f32
    %cst_40 = arith.constant -1.000000e+30 : f32
    %105 = arith.mulf %cst_39, %cst_40 : f32
    %106 = vector.broadcast %105 : f32 to vector<20x1xf32>
    %107 = arith.cmpf ogt, %104, %106 : vector<20x1xf32>
    %cst_41 = arith.constant 0.000000e+00 : f32
    %108 = vector.broadcast %cst_41 : f32 to vector<20x1xf32>
    %109 = arith.select %107, %104, %108 : vector<20x1xi1>, vector<20x1xf32>
    %cst_42 = arith.constant 0.000000e+00 : f32
    %110 = vector.broadcast %cst_42 : f32 to vector<20x1xf32>
    %cst_43 = arith.constant 0.000000e+00 : f32
    %111 = vector.broadcast %cst_43 : f32 to vector<20x16xf32>
    %c0_44 = arith.constant 0 : index
    %c0_45 = arith.constant 0 : index
    %c0_46 = arith.constant 0 : index
    %112 = vector.load %arg1[%c0_44, %c0_45, %c0_46] : memref<3x20x20xf32, #tpu.memory_space<vmem>>, vector<1x20x20xf32>
    %113 = vector.shape_cast %112 : vector<1x20x20xf32> to vector<20x20xf32>
    %cst_47 = arith.constant 0.000000e+00 : f32
    %114 = vector.broadcast %cst_47 : f32 to vector<20x20xf32>
    %115 = arith.cmpf ogt, %113, %114 : vector<20x20xf32>
    %116 = vector.extract_strided_slice %44 {offsets = [0, 0], sizes = [20, 1], strides = [1, 1]} : vector<20x3xf32> to vector<20x1xf32>
    %117 = vector.extract_strided_slice %46 {offsets = [0, 0], sizes = [1, 20], strides = [1, 1]} : vector<3x20xf32> to vector<1x20xf32>
    %118 = vector.broadcast %116 : vector<20x1xf32> to vector<20x20xf32>
    %119 = vector.broadcast %117 : vector<1x20xf32> to vector<20x20xf32>
    %120 = arith.addf %118, %119 : vector<20x20xf32>
    %cst_48 = arith.constant 0.000000e+00 : f32
    %121 = vector.broadcast %cst_48 : f32 to vector<20x20xf32>
    %122 = arith.cmpf ogt, %120, %121 : vector<20x20xf32>
    %cst_49 = arith.constant 2.000000e-01 : f32
    %123 = vector.broadcast %cst_49 : f32 to vector<20x20xf32>
    %124 = arith.mulf %123, %120 : vector<20x20xf32>
    %125 = arith.select %122, %120, %124 : vector<20x20xi1>, vector<20x20xf32>
    %126 = vector.broadcast %109 : vector<20x1xf32> to vector<20x20xf32>
    %127 = arith.subf %125, %126 : vector<20x20xf32>
    %128 = math.exp %127 : vector<20x20xf32>
    %cst_50 = arith.constant 0.000000e+00 : f32
    %129 = vector.broadcast %cst_50 : f32 to vector<20x20xf32>
    %130 = arith.select %115, %128, %129 : vector<20x20xi1>, vector<20x20xf32>
    %cst_51 = arith.constant dense<0.000000e+00> : vector<20xf32>
    %131 = vector.multi_reduction <add>, %130, %cst_51 [1] : vector<20x20xf32> to vector<20xf32>
    %132 = vector.shape_cast %131 : vector<20xf32> to vector<20x1xf32>
    %133 = arith.addf %110, %132 : vector<20x1xf32>
    %134 = vector.extract_strided_slice %41 {offsets = [0, 0], sizes = [20, 16], strides = [1, 1]} : vector<20x48xf32> to vector<20x16xf32>
    %cst_52 = arith.constant dense<0.000000e+00> : vector<20x16xf32>
    %135 = tpu.matmul %130, %134, %cst_52 {dimension_numbers = #tpu.dot_dimension_numbers<[1], [0], [0], [1], [0, 0, 1, 1], [], []>} : vector<20x20xf32>, vector<20x16xf32>, vector<20x16xf32> -> vector<20x16xf32>
    %136 = arith.addf %111, %135 : vector<20x16xf32>
    %c1_53 = arith.constant 1 : index
    %c0_54 = arith.constant 0 : index
    %c0_55 = arith.constant 0 : index
    %137 = vector.load %arg1[%c1_53, %c0_54, %c0_55] : memref<3x20x20xf32, #tpu.memory_space<vmem>>, vector<1x20x20xf32>
    %138 = vector.shape_cast %137 : vector<1x20x20xf32> to vector<20x20xf32>
    %cst_56 = arith.constant 0.000000e+00 : f32
    %139 = vector.broadcast %cst_56 : f32 to vector<20x20xf32>
    %140 = arith.cmpf ogt, %138, %139 : vector<20x20xf32>
    %141 = vector.extract_strided_slice %44 {offsets = [0, 1], sizes = [20, 1], strides = [1, 1]} : vector<20x3xf32> to vector<20x1xf32>
    %142 = vector.extract_strided_slice %46 {offsets = [1, 0], sizes = [1, 20], strides = [1, 1]} : vector<3x20xf32> to vector<1x20xf32>
    %143 = vector.broadcast %141 : vector<20x1xf32> to vector<20x20xf32>
    %144 = vector.broadcast %142 : vector<1x20xf32> to vector<20x20xf32>
    %145 = arith.addf %143, %144 : vector<20x20xf32>
    %cst_57 = arith.constant 0.000000e+00 : f32
    %146 = vector.broadcast %cst_57 : f32 to vector<20x20xf32>
    %147 = arith.cmpf ogt, %145, %146 : vector<20x20xf32>
    %cst_58 = arith.constant 2.000000e-01 : f32
    %148 = vector.broadcast %cst_58 : f32 to vector<20x20xf32>
    %149 = arith.mulf %148, %145 : vector<20x20xf32>
    %150 = arith.select %147, %145, %149 : vector<20x20xi1>, vector<20x20xf32>
    %151 = vector.broadcast %109 : vector<20x1xf32> to vector<20x20xf32>
    %152 = arith.subf %150, %151 : vector<20x20xf32>
    %153 = math.exp %152 : vector<20x20xf32>
    %cst_59 = arith.constant 0.000000e+00 : f32
    %154 = vector.broadcast %cst_59 : f32 to vector<20x20xf32>
    %155 = arith.select %140, %153, %154 : vector<20x20xi1>, vector<20x20xf32>
    %cst_60 = arith.constant dense<0.000000e+00> : vector<20xf32>
    %156 = vector.multi_reduction <add>, %155, %cst_60 [1] : vector<20x20xf32> to vector<20xf32>
    %157 = vector.shape_cast %156 : vector<20xf32> to vector<20x1xf32>
    %158 = arith.addf %133, %157 : vector<20x1xf32>
    %159 = vector.extract_strided_slice %41 {offsets = [0, 16], sizes = [20, 16], strides = [1, 1]} : vector<20x48xf32> to vector<20x16xf32>
    %cst_61 = arith.constant dense<0.000000e+00> : vector<20x16xf32>
    %160 = tpu.matmul %155, %159, %cst_61 {dimension_numbers = #tpu.dot_dimension_numbers<[1], [0], [0], [1], [0, 0, 1, 1], [], []>} : vector<20x20xf32>, vector<20x16xf32>, vector<20x16xf32> -> vector<20x16xf32>
    %161 = arith.addf %136, %160 : vector<20x16xf32>
    %c2_62 = arith.constant 2 : index
    %c0_63 = arith.constant 0 : index
    %c0_64 = arith.constant 0 : index
    %162 = vector.load %arg1[%c2_62, %c0_63, %c0_64] : memref<3x20x20xf32, #tpu.memory_space<vmem>>, vector<1x20x20xf32>
    %163 = vector.shape_cast %162 : vector<1x20x20xf32> to vector<20x20xf32>
    %cst_65 = arith.constant 0.000000e+00 : f32
    %164 = vector.broadcast %cst_65 : f32 to vector<20x20xf32>
    %165 = arith.cmpf ogt, %163, %164 : vector<20x20xf32>
    %166 = vector.extract_strided_slice %44 {offsets = [0, 2], sizes = [20, 1], strides = [1, 1]} : vector<20x3xf32> to vector<20x1xf32>
    %167 = vector.extract_strided_slice %46 {offsets = [2, 0], sizes = [1, 20], strides = [1, 1]} : vector<3x20xf32> to vector<1x20xf32>
    %168 = vector.broadcast %166 : vector<20x1xf32> to vector<20x20xf32>
    %169 = vector.broadcast %167 : vector<1x20xf32> to vector<20x20xf32>
    %170 = arith.addf %168, %169 : vector<20x20xf32>
    %cst_66 = arith.constant 0.000000e+00 : f32
    %171 = vector.broadcast %cst_66 : f32 to vector<20x20xf32>
    %172 = arith.cmpf ogt, %170, %171 : vector<20x20xf32>
    %cst_67 = arith.constant 2.000000e-01 : f32
    %173 = vector.broadcast %cst_67 : f32 to vector<20x20xf32>
    %174 = arith.mulf %173, %170 : vector<20x20xf32>
    %175 = arith.select %172, %170, %174 : vector<20x20xi1>, vector<20x20xf32>
    %176 = vector.broadcast %109 : vector<20x1xf32> to vector<20x20xf32>
    %177 = arith.subf %175, %176 : vector<20x20xf32>
    %178 = math.exp %177 : vector<20x20xf32>
    %cst_68 = arith.constant 0.000000e+00 : f32
    %179 = vector.broadcast %cst_68 : f32 to vector<20x20xf32>
    %180 = arith.select %165, %178, %179 : vector<20x20xi1>, vector<20x20xf32>
    %cst_69 = arith.constant dense<0.000000e+00> : vector<20xf32>
    %181 = vector.multi_reduction <add>, %180, %cst_69 [1] : vector<20x20xf32> to vector<20xf32>
    %182 = vector.shape_cast %181 : vector<20xf32> to vector<20x1xf32>
    %183 = arith.addf %158, %182 : vector<20x1xf32>
    %184 = vector.extract_strided_slice %41 {offsets = [0, 32], sizes = [20, 16], strides = [1, 1]} : vector<20x48xf32> to vector<20x16xf32>
    %cst_70 = arith.constant dense<0.000000e+00> : vector<20x16xf32>
    %185 = tpu.matmul %180, %184, %cst_70 {dimension_numbers = #tpu.dot_dimension_numbers<[1], [0], [0], [1], [0, 0, 1, 1], [], []>} : vector<20x20xf32>, vector<20x16xf32>, vector<20x16xf32> -> vector<20x16xf32>
    %186 = arith.addf %161, %185 : vector<20x16xf32>
    %cst_71 = arith.constant 0.000000e+00 : f32
    %187 = vector.broadcast %cst_71 : f32 to vector<20x1xf32>
    %188 = arith.cmpf ogt, %183, %187 : vector<20x1xf32>
    %189 = tpu.reciprocal %183 {approx = true} : vector<20x1xf32> -> vector<20x1xf32>
    %190 = arith.mulf %1, %189 : vector<20x1xf32>
    %cst_72 = arith.constant 0.000000e+00 : f32
    %191 = vector.broadcast %cst_72 : f32 to vector<20x1xf32>
    %192 = arith.select %188, %190, %191 : vector<20x1xi1>, vector<20x1xf32>
    %193 = vector.broadcast %192 : vector<20x1xf32> to vector<20x16xf32>
    %194 = arith.mulf %186, %193 : vector<20x16xf32>
    %195 = vector.extract_strided_slice %2 {offsets = [4, 0], sizes = [1, 16], strides = [1, 1]} : vector<8x48xf32> to vector<1x16xf32>
    %196 = vector.broadcast %195 : vector<1x16xf32> to vector<20x16xf32>
    %197 = arith.addf %194, %196 : vector<20x16xf32>
    %198 = arith.addf %197, %39 : vector<20x16xf32>
    %cst_73 = arith.constant 0.000000e+00 : f32
    %199 = vector.broadcast %cst_73 : f32 to vector<20x16xf32>
    %200 = arith.cmpf ogt, %198, %199 : vector<20x16xf32>
    %201 = math.exp %198 : vector<20x16xf32>
    %cst_74 = arith.constant 1.000000e+00 : f32
    %202 = vector.broadcast %cst_74 : f32 to vector<20x16xf32>
    %203 = arith.subf %201, %202 : vector<20x16xf32>
    %204 = arith.select %200, %198, %203 : vector<20x16xi1>, vector<20x16xf32>
    %c112 = arith.constant 112 : index
    %c0_75 = arith.constant 0 : index
    %205 = vector.load %arg2[%c112, %c0_75] : memref<216x48xf32, #tpu.memory_space<vmem>>, vector<16x48xf32>
    %cst_76 = arith.constant dense<0.000000e+00> : vector<20x48xf32>
    %206 = tpu.matmul %204, %205, %cst_76 {dimension_numbers = #tpu.dot_dimension_numbers<[1], [0], [0], [1], [0, 0, 1, 1], [], []>} : vector<20x16xf32>, vector<16x48xf32>, vector<20x48xf32> -> vector<20x48xf32>
    %c128 = arith.constant 128 : index
    %c0_77 = arith.constant 0 : index
    %207 = vector.load %arg2[%c128, %c0_77] : memref<216x48xf32, #tpu.memory_space<vmem>>, vector<48x6xf32>
    %cst_78 = arith.constant dense<0.000000e+00> : vector<20x6xf32>
    %208 = tpu.matmul %206, %207, %cst_78 {dimension_numbers = #tpu.dot_dimension_numbers<[1], [0], [0], [1], [0, 0, 1, 1], [], []>} : vector<20x48xf32>, vector<48x6xf32>, vector<20x6xf32> -> vector<20x6xf32>
    %209 = vector.extract_strided_slice %208 {offsets = [0, 0], sizes = [20, 3], strides = [1, 1]} : vector<20x6xf32> to vector<20x3xf32>
    %210 = vector.extract_strided_slice %208 {offsets = [0, 3], sizes = [20, 3], strides = [1, 1]} : vector<20x6xf32> to vector<20x3xf32>
    %211 = tpu.transpose %210, [1, 0] : vector<20x3xf32> -> vector<3x20xf32>
    %cst_79 = arith.constant -1.000000e+30 : f32
    %212 = vector.broadcast %cst_79 : f32 to vector<20x1xf32>
    %c0_80 = arith.constant 0 : index
    %c0_81 = arith.constant 0 : index
    %c0_82 = arith.constant 0 : index
    %213 = vector.load %arg1[%c0_80, %c0_81, %c0_82] : memref<3x20x20xf32, #tpu.memory_space<vmem>>, vector<1x20x20xf32>
    %214 = vector.shape_cast %213 : vector<1x20x20xf32> to vector<20x20xf32>
    %cst_83 = arith.constant 0.000000e+00 : f32
    %215 = vector.broadcast %cst_83 : f32 to vector<20x20xf32>
    %216 = arith.cmpf ogt, %214, %215 : vector<20x20xf32>
    %217 = vector.extract_strided_slice %209 {offsets = [0, 0], sizes = [20, 1], strides = [1, 1]} : vector<20x3xf32> to vector<20x1xf32>
    %218 = vector.extract_strided_slice %211 {offsets = [0, 0], sizes = [1, 20], strides = [1, 1]} : vector<3x20xf32> to vector<1x20xf32>
    %219 = vector.broadcast %217 : vector<20x1xf32> to vector<20x20xf32>
    %220 = vector.broadcast %218 : vector<1x20xf32> to vector<20x20xf32>
    %221 = arith.addf %219, %220 : vector<20x20xf32>
    %cst_84 = arith.constant 0.000000e+00 : f32
    %222 = vector.broadcast %cst_84 : f32 to vector<20x20xf32>
    %223 = arith.cmpf ogt, %221, %222 : vector<20x20xf32>
    %cst_85 = arith.constant 2.000000e-01 : f32
    %224 = vector.broadcast %cst_85 : f32 to vector<20x20xf32>
    %225 = arith.mulf %224, %221 : vector<20x20xf32>
    %226 = arith.select %223, %221, %225 : vector<20x20xi1>, vector<20x20xf32>
    %cst_86 = arith.constant -1.000000e+30 : f32
    %227 = vector.broadcast %cst_86 : f32 to vector<20x20xf32>
    %228 = arith.select %216, %226, %227 : vector<20x20xi1>, vector<20x20xf32>
    %cst_87 = arith.constant dense<0xFF800000> : vector<20xf32>
    %229 = vector.multi_reduction <maximumf>, %228, %cst_87 [1] : vector<20x20xf32> to vector<20xf32>
    %230 = vector.shape_cast %229 : vector<20xf32> to vector<20x1xf32>
    %231 = arith.maximumf %212, %230 : vector<20x1xf32>
    %c1_88 = arith.constant 1 : index
    %c0_89 = arith.constant 0 : index
    %c0_90 = arith.constant 0 : index
    %232 = vector.load %arg1[%c1_88, %c0_89, %c0_90] : memref<3x20x20xf32, #tpu.memory_space<vmem>>, vector<1x20x20xf32>
    %233 = vector.shape_cast %232 : vector<1x20x20xf32> to vector<20x20xf32>
    %cst_91 = arith.constant 0.000000e+00 : f32
    %234 = vector.broadcast %cst_91 : f32 to vector<20x20xf32>
    %235 = arith.cmpf ogt, %233, %234 : vector<20x20xf32>
    %236 = vector.extract_strided_slice %209 {offsets = [0, 1], sizes = [20, 1], strides = [1, 1]} : vector<20x3xf32> to vector<20x1xf32>
    %237 = vector.extract_strided_slice %211 {offsets = [1, 0], sizes = [1, 20], strides = [1, 1]} : vector<3x20xf32> to vector<1x20xf32>
    %238 = vector.broadcast %236 : vector<20x1xf32> to vector<20x20xf32>
    %239 = vector.broadcast %237 : vector<1x20xf32> to vector<20x20xf32>
    %240 = arith.addf %238, %239 : vector<20x20xf32>
    %cst_92 = arith.constant 0.000000e+00 : f32
    %241 = vector.broadcast %cst_92 : f32 to vector<20x20xf32>
    %242 = arith.cmpf ogt, %240, %241 : vector<20x20xf32>
    %cst_93 = arith.constant 2.000000e-01 : f32
    %243 = vector.broadcast %cst_93 : f32 to vector<20x20xf32>
    %244 = arith.mulf %243, %240 : vector<20x20xf32>
    %245 = arith.select %242, %240, %244 : vector<20x20xi1>, vector<20x20xf32>
    %cst_94 = arith.constant -1.000000e+30 : f32
    %246 = vector.broadcast %cst_94 : f32 to vector<20x20xf32>
    %247 = arith.select %235, %245, %246 : vector<20x20xi1>, vector<20x20xf32>
    %cst_95 = arith.constant dense<0xFF800000> : vector<20xf32>
    %248 = vector.multi_reduction <maximumf>, %247, %cst_95 [1] : vector<20x20xf32> to vector<20xf32>
    %249 = vector.shape_cast %248 : vector<20xf32> to vector<20x1xf32>
    %250 = arith.maximumf %231, %249 : vector<20x1xf32>
    %c2_96 = arith.constant 2 : index
    %c0_97 = arith.constant 0 : index
    %c0_98 = arith.constant 0 : index
    %251 = vector.load %arg1[%c2_96, %c0_97, %c0_98] : memref<3x20x20xf32, #tpu.memory_space<vmem>>, vector<1x20x20xf32>
    %252 = vector.shape_cast %251 : vector<1x20x20xf32> to vector<20x20xf32>
    %cst_99 = arith.constant 0.000000e+00 : f32
    %253 = vector.broadcast %cst_99 : f32 to vector<20x20xf32>
    %254 = arith.cmpf ogt, %252, %253 : vector<20x20xf32>
    %255 = vector.extract_strided_slice %209 {offsets = [0, 2], sizes = [20, 1], strides = [1, 1]} : vector<20x3xf32> to vector<20x1xf32>
    %256 = vector.extract_strided_slice %211 {offsets = [2, 0], sizes = [1, 20], strides = [1, 1]} : vector<3x20xf32> to vector<1x20xf32>
    %257 = vector.broadcast %255 : vector<20x1xf32> to vector<20x20xf32>
    %258 = vector.broadcast %256 : vector<1x20xf32> to vector<20x20xf32>
    %259 = arith.addf %257, %258 : vector<20x20xf32>
    %cst_100 = arith.constant 0.000000e+00 : f32
    %260 = vector.broadcast %cst_100 : f32 to vector<20x20xf32>
    %261 = arith.cmpf ogt, %259, %260 : vector<20x20xf32>
    %cst_101 = arith.constant 2.000000e-01 : f32
    %262 = vector.broadcast %cst_101 : f32 to vector<20x20xf32>
    %263 = arith.mulf %262, %259 : vector<20x20xf32>
    %264 = arith.select %261, %259, %263 : vector<20x20xi1>, vector<20x20xf32>
    %cst_102 = arith.constant -1.000000e+30 : f32
    %265 = vector.broadcast %cst_102 : f32 to vector<20x20xf32>
    %266 = arith.select %254, %264, %265 : vector<20x20xi1>, vector<20x20xf32>
    %cst_103 = arith.constant dense<0xFF800000> : vector<20xf32>
    %267 = vector.multi_reduction <maximumf>, %266, %cst_103 [1] : vector<20x20xf32> to vector<20xf32>
    %268 = vector.shape_cast %267 : vector<20xf32> to vector<20x1xf32>
    %269 = arith.maximumf %250, %268 : vector<20x1xf32>
    %cst_104 = arith.constant 5.000000e-01 : f32
    %cst_105 = arith.constant -1.000000e+30 : f32
    %270 = arith.mulf %cst_104, %cst_105 : f32
    %271 = vector.broadcast %270 : f32 to vector<20x1xf32>
    %272 = arith.cmpf ogt, %269, %271 : vector<20x1xf32>
    %cst_106 = arith.constant 0.000000e+00 : f32
    %273 = vector.broadcast %cst_106 : f32 to vector<20x1xf32>
    %274 = arith.select %272, %269, %273 : vector<20x1xi1>, vector<20x1xf32>
    %cst_107 = arith.constant 0.000000e+00 : f32
    %275 = vector.broadcast %cst_107 : f32 to vector<20x1xf32>
    %cst_108 = arith.constant 0.000000e+00 : f32
    %276 = vector.broadcast %cst_108 : f32 to vector<20x16xf32>
    %c0_109 = arith.constant 0 : index
    %c0_110 = arith.constant 0 : index
    %c0_111 = arith.constant 0 : index
    %277 = vector.load %arg1[%c0_109, %c0_110, %c0_111] : memref<3x20x20xf32, #tpu.memory_space<vmem>>, vector<1x20x20xf32>
    %278 = vector.shape_cast %277 : vector<1x20x20xf32> to vector<20x20xf32>
    %cst_112 = arith.constant 0.000000e+00 : f32
    %279 = vector.broadcast %cst_112 : f32 to vector<20x20xf32>
    %280 = arith.cmpf ogt, %278, %279 : vector<20x20xf32>
    %281 = vector.extract_strided_slice %209 {offsets = [0, 0], sizes = [20, 1], strides = [1, 1]} : vector<20x3xf32> to vector<20x1xf32>
    %282 = vector.extract_strided_slice %211 {offsets = [0, 0], sizes = [1, 20], strides = [1, 1]} : vector<3x20xf32> to vector<1x20xf32>
    %283 = vector.broadcast %281 : vector<20x1xf32> to vector<20x20xf32>
    %284 = vector.broadcast %282 : vector<1x20xf32> to vector<20x20xf32>
    %285 = arith.addf %283, %284 : vector<20x20xf32>
    %cst_113 = arith.constant 0.000000e+00 : f32
    %286 = vector.broadcast %cst_113 : f32 to vector<20x20xf32>
    %287 = arith.cmpf ogt, %285, %286 : vector<20x20xf32>
    %cst_114 = arith.constant 2.000000e-01 : f32
    %288 = vector.broadcast %cst_114 : f32 to vector<20x20xf32>
    %289 = arith.mulf %288, %285 : vector<20x20xf32>
    %290 = arith.select %287, %285, %289 : vector<20x20xi1>, vector<20x20xf32>
    %291 = vector.broadcast %274 : vector<20x1xf32> to vector<20x20xf32>
    %292 = arith.subf %290, %291 : vector<20x20xf32>
    %293 = math.exp %292 : vector<20x20xf32>
    %cst_115 = arith.constant 0.000000e+00 : f32
    %294 = vector.broadcast %cst_115 : f32 to vector<20x20xf32>
    %295 = arith.select %280, %293, %294 : vector<20x20xi1>, vector<20x20xf32>
    %cst_116 = arith.constant dense<0.000000e+00> : vector<20xf32>
    %296 = vector.multi_reduction <add>, %295, %cst_116 [1] : vector<20x20xf32> to vector<20xf32>
    %297 = vector.shape_cast %296 : vector<20xf32> to vector<20x1xf32>
    %298 = arith.addf %275, %297 : vector<20x1xf32>
    %299 = vector.extract_strided_slice %206 {offsets = [0, 0], sizes = [20, 16], strides = [1, 1]} : vector<20x48xf32> to vector<20x16xf32>
    %cst_117 = arith.constant dense<0.000000e+00> : vector<20x16xf32>
    %300 = tpu.matmul %295, %299, %cst_117 {dimension_numbers = #tpu.dot_dimension_numbers<[1], [0], [0], [1], [0, 0, 1, 1], [], []>} : vector<20x20xf32>, vector<20x16xf32>, vector<20x16xf32> -> vector<20x16xf32>
    %301 = arith.addf %276, %300 : vector<20x16xf32>
    %c1_118 = arith.constant 1 : index
    %c0_119 = arith.constant 0 : index
    %c0_120 = arith.constant 0 : index
    %302 = vector.load %arg1[%c1_118, %c0_119, %c0_120] : memref<3x20x20xf32, #tpu.memory_space<vmem>>, vector<1x20x20xf32>
    %303 = vector.shape_cast %302 : vector<1x20x20xf32> to vector<20x20xf32>
    %cst_121 = arith.constant 0.000000e+00 : f32
    %304 = vector.broadcast %cst_121 : f32 to vector<20x20xf32>
    %305 = arith.cmpf ogt, %303, %304 : vector<20x20xf32>
    %306 = vector.extract_strided_slice %209 {offsets = [0, 1], sizes = [20, 1], strides = [1, 1]} : vector<20x3xf32> to vector<20x1xf32>
    %307 = vector.extract_strided_slice %211 {offsets = [1, 0], sizes = [1, 20], strides = [1, 1]} : vector<3x20xf32> to vector<1x20xf32>
    %308 = vector.broadcast %306 : vector<20x1xf32> to vector<20x20xf32>
    %309 = vector.broadcast %307 : vector<1x20xf32> to vector<20x20xf32>
    %310 = arith.addf %308, %309 : vector<20x20xf32>
    %cst_122 = arith.constant 0.000000e+00 : f32
    %311 = vector.broadcast %cst_122 : f32 to vector<20x20xf32>
    %312 = arith.cmpf ogt, %310, %311 : vector<20x20xf32>
    %cst_123 = arith.constant 2.000000e-01 : f32
    %313 = vector.broadcast %cst_123 : f32 to vector<20x20xf32>
    %314 = arith.mulf %313, %310 : vector<20x20xf32>
    %315 = arith.select %312, %310, %314 : vector<20x20xi1>, vector<20x20xf32>
    %316 = vector.broadcast %274 : vector<20x1xf32> to vector<20x20xf32>
    %317 = arith.subf %315, %316 : vector<20x20xf32>
    %318 = math.exp %317 : vector<20x20xf32>
    %cst_124 = arith.constant 0.000000e+00 : f32
    %319 = vector.broadcast %cst_124 : f32 to vector<20x20xf32>
    %320 = arith.select %305, %318, %319 : vector<20x20xi1>, vector<20x20xf32>
    %cst_125 = arith.constant dense<0.000000e+00> : vector<20xf32>
    %321 = vector.multi_reduction <add>, %320, %cst_125 [1] : vector<20x20xf32> to vector<20xf32>
    %322 = vector.shape_cast %321 : vector<20xf32> to vector<20x1xf32>
    %323 = arith.addf %298, %322 : vector<20x1xf32>
    %324 = vector.extract_strided_slice %206 {offsets = [0, 16], sizes = [20, 16], strides = [1, 1]} : vector<20x48xf32> to vector<20x16xf32>
    %cst_126 = arith.constant dense<0.000000e+00> : vector<20x16xf32>
    %325 = tpu.matmul %320, %324, %cst_126 {dimension_numbers = #tpu.dot_dimension_numbers<[1], [0], [0], [1], [0, 0, 1, 1], [], []>} : vector<20x20xf32>, vector<20x16xf32>, vector<20x16xf32> -> vector<20x16xf32>
    %326 = arith.addf %301, %325 : vector<20x16xf32>
    %c2_127 = arith.constant 2 : index
    %c0_128 = arith.constant 0 : index
    %c0_129 = arith.constant 0 : index
    %327 = vector.load %arg1[%c2_127, %c0_128, %c0_129] : memref<3x20x20xf32, #tpu.memory_space<vmem>>, vector<1x20x20xf32>
    %328 = vector.shape_cast %327 : vector<1x20x20xf32> to vector<20x20xf32>
    %cst_130 = arith.constant 0.000000e+00 : f32
    %329 = vector.broadcast %cst_130 : f32 to vector<20x20xf32>
    %330 = arith.cmpf ogt, %328, %329 : vector<20x20xf32>
    %331 = vector.extract_strided_slice %209 {offsets = [0, 2], sizes = [20, 1], strides = [1, 1]} : vector<20x3xf32> to vector<20x1xf32>
    %332 = vector.extract_strided_slice %211 {offsets = [2, 0], sizes = [1, 20], strides = [1, 1]} : vector<3x20xf32> to vector<1x20xf32>
    %333 = vector.broadcast %331 : vector<20x1xf32> to vector<20x20xf32>
    %334 = vector.broadcast %332 : vector<1x20xf32> to vector<20x20xf32>
    %335 = arith.addf %333, %334 : vector<20x20xf32>
    %cst_131 = arith.constant 0.000000e+00 : f32
    %336 = vector.broadcast %cst_131 : f32 to vector<20x20xf32>
    %337 = arith.cmpf ogt, %335, %336 : vector<20x20xf32>
    %cst_132 = arith.constant 2.000000e-01 : f32
    %338 = vector.broadcast %cst_132 : f32 to vector<20x20xf32>
    %339 = arith.mulf %338, %335 : vector<20x20xf32>
    %340 = arith.select %337, %335, %339 : vector<20x20xi1>, vector<20x20xf32>
    %341 = vector.broadcast %274 : vector<20x1xf32> to vector<20x20xf32>
    %342 = arith.subf %340, %341 : vector<20x20xf32>
    %343 = math.exp %342 : vector<20x20xf32>
    %cst_133 = arith.constant 0.000000e+00 : f32
    %344 = vector.broadcast %cst_133 : f32 to vector<20x20xf32>
    %345 = arith.select %330, %343, %344 : vector<20x20xi1>, vector<20x20xf32>
    %cst_134 = arith.constant dense<0.000000e+00> : vector<20xf32>
    %346 = vector.multi_reduction <add>, %345, %cst_134 [1] : vector<20x20xf32> to vector<20xf32>
    %347 = vector.shape_cast %346 : vector<20xf32> to vector<20x1xf32>
    %348 = arith.addf %323, %347 : vector<20x1xf32>
    %349 = vector.extract_strided_slice %206 {offsets = [0, 32], sizes = [20, 16], strides = [1, 1]} : vector<20x48xf32> to vector<20x16xf32>
    %cst_135 = arith.constant dense<0.000000e+00> : vector<20x16xf32>
    %350 = tpu.matmul %345, %349, %cst_135 {dimension_numbers = #tpu.dot_dimension_numbers<[1], [0], [0], [1], [0, 0, 1, 1], [], []>} : vector<20x20xf32>, vector<20x16xf32>, vector<20x16xf32> -> vector<20x16xf32>
    %351 = arith.addf %326, %350 : vector<20x16xf32>
    %cst_136 = arith.constant 0.000000e+00 : f32
    %352 = vector.broadcast %cst_136 : f32 to vector<20x1xf32>
    %353 = arith.cmpf ogt, %348, %352 : vector<20x1xf32>
    %354 = tpu.reciprocal %348 {approx = true} : vector<20x1xf32> -> vector<20x1xf32>
    %355 = arith.mulf %1, %354 : vector<20x1xf32>
    %cst_137 = arith.constant 0.000000e+00 : f32
    %356 = vector.broadcast %cst_137 : f32 to vector<20x1xf32>
    %357 = arith.select %353, %355, %356 : vector<20x1xi1>, vector<20x1xf32>
    %358 = vector.broadcast %357 : vector<20x1xf32> to vector<20x16xf32>
    %359 = arith.mulf %351, %358 : vector<20x16xf32>
    %360 = vector.extract_strided_slice %2 {offsets = [5, 0], sizes = [1, 16], strides = [1, 1]} : vector<8x48xf32> to vector<1x16xf32>
    %361 = vector.broadcast %360 : vector<1x16xf32> to vector<20x16xf32>
    %362 = arith.addf %359, %361 : vector<20x16xf32>
    %363 = arith.addf %362, %39 : vector<20x16xf32>
    %cst_138 = arith.constant 0.000000e+00 : f32
    %364 = vector.broadcast %cst_138 : f32 to vector<20x16xf32>
    %365 = arith.cmpf ogt, %363, %364 : vector<20x16xf32>
    %366 = math.exp %363 : vector<20x16xf32>
    %cst_139 = arith.constant 1.000000e+00 : f32
    %367 = vector.broadcast %cst_139 : f32 to vector<20x16xf32>
    %368 = arith.subf %366, %367 : vector<20x16xf32>
    %369 = arith.select %365, %363, %368 : vector<20x16xi1>, vector<20x16xf32>
    %370 = vector.extract_strided_slice %369 {offsets = [0, 0], sizes = [12, 16], strides = [1, 1]} : vector<20x16xf32> to vector<12x16xf32>
    %c176 = arith.constant 176 : index
    %c0_140 = arith.constant 0 : index
    %371 = vector.load %arg2[%c176, %c0_140] : memref<216x48xf32, #tpu.memory_space<vmem>>, vector<16x16xf32>
    %cst_141 = arith.constant dense<0.000000e+00> : vector<12x16xf32>
    %372 = tpu.matmul %370, %371, %cst_141 {dimension_numbers = #tpu.dot_dimension_numbers<[1], [0], [0], [1], [0, 0, 1, 1], [], []>} : vector<12x16xf32>, vector<16x16xf32>, vector<12x16xf32> -> vector<12x16xf32>
    %373 = vector.extract_strided_slice %2 {offsets = [6, 0], sizes = [1, 16], strides = [1, 1]} : vector<8x48xf32> to vector<1x16xf32>
    %374 = vector.broadcast %373 : vector<1x16xf32> to vector<12x16xf32>
    %375 = arith.addf %372, %374 : vector<12x16xf32>
    %cst_142 = arith.constant 0.000000e+00 : f32
    %376 = vector.broadcast %cst_142 : f32 to vector<12x16xf32>
    %377 = arith.cmpf ogt, %375, %376 : vector<12x16xf32>
    %378 = math.exp %375 : vector<12x16xf32>
    %cst_143 = arith.constant 1.000000e+00 : f32
    %379 = vector.broadcast %cst_143 : f32 to vector<12x16xf32>
    %380 = arith.subf %378, %379 : vector<12x16xf32>
    %381 = arith.select %377, %375, %380 : vector<12x16xi1>, vector<12x16xf32>
    %c192 = arith.constant 192 : index
    %c0_144 = arith.constant 0 : index
    %382 = vector.load %arg2[%c192, %c0_144] : memref<216x48xf32, #tpu.memory_space<vmem>>, vector<16x4xf32>
    %cst_145 = arith.constant dense<0.000000e+00> : vector<12x4xf32>
    %383 = tpu.matmul %381, %382, %cst_145 {dimension_numbers = #tpu.dot_dimension_numbers<[1], [0], [0], [1], [0, 0, 1, 1], [], []>} : vector<12x16xf32>, vector<16x4xf32>, vector<12x4xf32> -> vector<12x4xf32>
    %384 = vector.extract_strided_slice %2 {offsets = [7, 0], sizes = [1, 4], strides = [1, 1]} : vector<8x48xf32> to vector<1x4xf32>
    %385 = vector.broadcast %384 : vector<1x4xf32> to vector<12x4xf32>
    %386 = arith.addf %383, %385 : vector<12x4xf32>
    %c0_146 = arith.constant 0 : index
    %c0_147 = arith.constant 0 : index
    %387 = vector.load %arg3[%c0_146, %c0_147] : memref<12x4xf32, #tpu.memory_space<vmem>>, vector<12x4xf32>
    tpu.vector_store %arg3[%c0_146, %c0_147], %386 {strides = array<i32>} : memref<12x4xf32, #tpu.memory_space<vmem>>, vector<12x4xf32>,
    return
  }
}

</mosaic_0001>

<bundles_post_ra>
// kernel: forward.1
= control target key start
LH: loop header
LB: loop body
LE: loop exit
PB: predicated region body
PF: predicated region fallthrough
CT: control target
= control target key end

     0   :  { %8 = vsyncpa [#allocation3], 0  ;;  %s2594_s12 = smov [#allocation2]   ;;  %s3185_s0 = inlined_call_operand.vmem [shape: f32[20,33], index: 0, kind: input, shape index: {}]   ;;  %s3186_s1 = inlined_call_operand.vmem [shape: f32[3,20,20], index: 1, kind: input, shape index: {}]   ;;  %s3187_s2 = inlined_call_operand.hbm [shape: f32[216,48], index: 2, kind: input, shape index: {}]   ;;  %s3188_s3 = inlined_call_operand.vmem [shape: f32[12,4], index: 3, kind: output, shape index: {}]  }
   0x1   :  { %s18_s13 = sshll.u32 %s2594_s12, 4  ;;  %s2570_s16 = scalar_lea.hbm %s3187_s2, 3456  ;;  %s19_s13 = int_to_ptr.vmem [resolvable:$true] %s18_s13 }
   0x2   :  { %p2571_p0 = scmp.ne.s32.totalorder %s3187_s2, %s2570_s16  ;;  %p2574_p1 = scmp.lt.u32.totalorder %s2570_s16, %s3187_s2 }
   0x4   :  { %p2576_p2 = pnand %p2574_p1, %p2571_p0 }
   0x6   :  { %2579 = shalt.err (!%p2576_p2)
}
   0x7   :  { %s2580_s21 = scalar_lea.vmem %s19_s13, 3456  ;;  %p2585_p4 = scmp.lt.s32.totalorder %s19_s13, %s19_s13 }
   0x8   :  { %p2581_p3 = scmp.ne.s32.totalorder %s19_s13, %s2580_s21  ;;  %p2586_p5 = scmp.lt.s32.totalorder %s2580_s21, %s2580_s21 }
   0xa   :  { %p2587_p6 = por %p2586_p5, %p2585_p4 }
   0xc   :  { %p2588_p7 = pnand %p2587_p6, %p2581_p3 }
   0xe   :  { %2591 = shalt.err (!%p2588_p7)
}
   0xf   :  { %s2595_s22 = smov 128   ;;  %s2596_s23 = smov 8  }
  0x10   :  { %24 = dma.hbm_to_vmem [thread:$0]  %s3187_s2, 3456, %s19_s13, [#allocation3], %s2595_s22, %s2595_s22, %s2596_s23  }
  0x11   :  { %2592 = dma.done.wait [#allocation3], 3456  }
  0x12   :  { %2593 = vsyncadd [#allocation3], 4294963840  ;;  %v2597_v0 = vmov 0.0|0.0   ;;  %vm2598_vm0 = vmmov 0   ;;  %v2599_v1 = vmov 0.0   ;;  %v32_v2 = vld [vmem:[#allocation2] sm:$0xff]  ;;  %v36_v14 = vlaneseq }
  0x13   :  { %2371 = vmatprep.subr.bf16.mxu0 %v2597_v0  ;;  %2177 = vmatprep.mubr.msk.f32.mxu0 %vm2598_vm0, %v2599_v1  ;;  %v33_v3 = vld [vmem:[#allocation2 + $0x8] sm:$0xff]  ;;  %v34_v4 = vld [vmem:[#allocation2 + $0x10] sm:$0xff]  ;;  %v35_v6 = vld [vmem:[#allocation2 + $0x18] sm:$0xff]  ;;  %vm54_vm1 = vcmask 261120   ;;  %vm161_vm3 = vcmask 130048   ;;  %v2600_v56 = vmov 0  }
  0x14   :  { %2377 = vmatprep.subr.bf16.mxu1 %v2597_v0  ;;  %2190 = vmatprep.mubr.msk.f32.mxu1 %vm2598_vm0, %v2599_v1  ;;  %v2372_v5 = vpack.c.bf16 %v33_v3, %v32_v2  ;;  %v2375_v7 = vpack.c.bf16 %v35_v6, %v34_v4  ;;  %v2649_v8 = vld [vmem:[%s3185_s0] sm:$0xff]  ;;  %v2658_v9 = vld [vmem:[%s3185_s0 + $0x8] sm:$0xff]  ;;  %v2666_v10 = vld [vmem:[%s3185_s0 + $0x10] sm:$0xf]  ;;  %v2672_v15 = vshrl.u32 %v36_v14, 7  ;;  %vm3189_vm7 = vcmask 392192  }
  0x15   :  { %v159_v11 = vld [vmem:[#allocation2 + $0x20] sm:$0xff]  ;;  %v160_v12 = vld [vmem:[#allocation2 + $0x28] sm:$0xff]  ;;  %v2677_v17 = vld [vmem:[#allocation2 + $0xd0] sm:$0xff]  ;;  %2463 = vset.pattern.permute.xlu1 %v2600_v56  ;;  %s2602_s4 = smov 125   ;;  %vm539_vm12 = vcmask 162816   ;;  %s2604_s11 = smov 112  }
  0x16   :  { %2373 = vmatpush3.bf16.msra.mxu0 %v2372_v5  ;;  %v2378_v13 = vpack.c.bf16 %v160_v12, %v159_v11  ;;  %v2675_v16 = vsub.s32 0, %v2672_v15  ;;  %v2680_v18 = vsub.s32 1, %v2672_v15  ;;  %v2683_v19 = vadd.s32 8, %v2672_v15  ;;  %v280_v35 = vld [vmem:[#allocation2 + $0x30] sm:$0xff]  ;;  %v281_v36 = vld [vmem:[#allocation2 + $0x38] sm:$0xff]  ;;  %v362_v47 = vld [vmem:[#allocation2 + $0x40] sm:$0xff] }
  0x17   :  { %2374 = vmatprep.subr.bf16.mxu0 %v2597_v0  ;;  %v2381_v39 = vpack.c.bf16 %v281_v36, %v280_v35  ;;  %v363_v48 = vld [vmem:[#allocation2 + $0x48] sm:$0xff]  ;;  %v364_v50 = vld [vmem:[#allocation2 + $0x50] sm:$0xff]  ;;  %v365_v51 = vld [vmem:[#allocation2 + $0x58] sm:$0xff]  ;;  %v2601_v12 = vmov 1   ;;  %s2605_s12 = smov 96  }
  0x18   :  { %2379 = vmatpush3.bf16.msra.mxu1 %v2378_v13  ;;  %v46_v20 = vrot.slane %v2677_v17, %v2675_v16  ;;  %v50_v21 = vrot.slane %v2677_v17, %v2680_v18  ;;  %vm41_vm2 = vcmp.lt.s32.totalorder %v2683_v19, 12  ;;  %v2384_v49 = vpack.c.bf16 %v363_v48, %v362_v47  ;;  %v366_v53 = vld [vmem:[#allocation2 + $0x60] sm:$0xff]  ;;  %v367_v54 = vld [vmem:[#allocation2 + $0x68] sm:$0xff]  ;;  %2464 = vset.pattern.permute.xlu0 %v2601_v12 }
  0x19   :  { %2380 = vmatprep.subr.bf16.mxu1 %v2597_v0  ;;  %v2387_v52 = vpack.c.bf16 %v365_v51, %v364_v50  ;;  %v2390_v55 = vpack.c.bf16 %v367_v54, %v366_v53 }
  0x1a   :  { %2376 = vmatpush3.bf16.msra.mxu0 %v2375_v7  ;;  %v52_v25 = vsel %vm41_vm2, %v46_v20, %v50_v21 }
  0x1b   :  { %2401 = vmatprep.subr.bf16.mxu0 %v2597_v0 }
  0x1d   :  { %2178 = vmatmul.mubr.msk.f32.vlgmr.msra.gmra.mrb[0].mxu0 %vm54_vm1, %v2649_v8 }
  0x1e   :  { %2180 = vmatprep.mubr.msk.f32.mxu0 %vm2598_vm0, %v2599_v1 }
  0x21   :  { %2181 = vmatmul.mubr.msk.f32.gmra.mrb[2].mxu0 %vm54_vm1, %v2658_v9 }
  0x22   :  { %2183 = vmatprep.mubr.msk.f32.mxu0 %vm2598_vm0, %v2599_v1 }
  0x25   :  { %2184 = vmatmul.mubr.msk.f32.gmra.mrb[4].mxu0 %vm54_vm1, %v2666_v10 }
  0x26   :  { %2282 = vmatprep.mubr.msk.f32.mxu0 %vm2598_vm0, %v2599_v1 }
  0xf0   :  { %v130_v22 = vpop.f32.mrb[0].mxu0 }
  0xf1   :  { %v131_v23 = vadd.f32 %v130_v22, %v46_v20  ;;  %v2179_v24 = vpop.f32.mrb[1].mxu0 }
  0xf3   :  { %v147_v26 = vmul.f32 1.442695, %v131_v23  ;;  %vm144_vm4 = vcmp.gt.f32.partialorder %v131_v23, 0.0 }
  0xf4   :  { %v135_v27 = vpop.f32.mrb[2].mxu0 }
  0xf5   :  { %2501 = vpow2.f32 %v147_v26  ;;  %v136_v28 = vadd.f32 %v135_v27, %v52_v25  ;;  %v2182_v29 = vpop.f32.mrb[3].mxu0 }
  0xf7   :  { %v149_v30 = vmul.f32 1.442695, %v136_v28  ;;  %vm145_vm5 = vcmp.gt.f32.partialorder %v136_v28, 0.0 }
  0xf8   :  { %v140_v31 = vpop.f32.mrb[4].mxu0 }
  0xf9   :  { %2503 = vpow2.f32 %v149_v30  ;;  %v141_v32 = vadd.f32 %v140_v31, %v50_v21  ;;  %v2185_v33 = vpop.f32.mrb[5].mxu0  ;;  %v2603_v21 = vmov 2  }
  0xfb   :  { %v151_v34 = vmul.f32 1.442695, %v141_v32  ;;  %vm146_vm6 = vcmp.gt.f32.partialorder %v141_v32, 0.0 }
  0xfd   :  { %2505 = vpow2.f32 %v151_v34 }
  0xff   :  { %v2502_v37 = vpop.eup %2501 }
 0x100   :  { %v2026_v38 = vadd.f32 -1.0, %v2502_v37  ;;  %v2759_v37 = vld [vmem:[%s3186_s1 + $0x8] sm:$0xff] }
 0x101   :  { %vm506_vm8 = vcmp.gt.f32.partialorder %v2759_v37, 0.0 }
 0x102   :  { %v156_v40 = vsel %vm144_vm4, %v131_v23, %v2026_v38  ;;  %v2764_v38 = vld [vmem:[%s3186_s1] sm:$0xff] }
 0x103   :  { %v2504_v41 = vpop.eup %2503  ;;  %2191 = vmatmul.mubr.msk.f32.vlgmr.msra.gmra.mrb[0].mxu1 %vm161_vm3, %v156_v40  ;;  %vm505_vm9 = vcmp.gt.f32.partialorder %v2764_v38, 0.0 }
 0x104   :  { %2382 = vmatpush3.bf16.msra.mxu1 %v2381_v39  ;;  %2193 = vmatprep.mubr.msk.f32.mxu1 %vm2598_vm0, %v2599_v1  ;;  %v2027_v42 = vadd.f32 -1.0, %v2504_v41 }
 0x105   :  { %2383 = vmatprep.subr.bf16.mxu1 %v2597_v0 }
 0x106   :  { %v157_v43 = vsel %vm145_vm5, %v136_v28, %v2027_v42  ;;  %v2771_v42 = vld [vmem:[%s3186_s1 + $0x18] sm:$0xff] }
 0x107   :  { %v2506_v44 = vpop.eup %2505  ;;  %2194 = vmatmul.mubr.msk.f32.gmra.mrb[2].mxu1 %vm161_vm3, %v157_v43  ;;  %vm557_vm14 = vcmp.gt.f32.partialorder %v2771_v42, 0.0 }
 0x108   :  { %2196 = vmatprep.mubr.msk.f32.mxu1 %vm2598_vm0, %v2599_v1  ;;  %v2028_v45 = vadd.f32 -1.0, %v2506_v44 }
 0x10a   :  { %v158_v46 = vsel %vm146_vm6, %v141_v32, %v2028_v45 }
 0x10b   :  { %2197 = vmatmul.mubr.msk.f32.gmra.mrb[4].mxu1 %vm161_vm3, %v158_v46 }
 0x10c   :  { %2203 = vmatprep.mubr.msk.f32.mxu1 %vm2598_vm0, %v2599_v1 }
 0x10f   :  { %2204 = vmatmul.mubr.msk.f32.vlgmr.msra.gmra.mrb[6].mxu1 %vm161_vm3, %v156_v40 }
 0x110   :  { %2206 = vmatprep.mubr.msk.f32.mxu1 %vm2598_vm0, %v2599_v1  ;;  %2385 = vmatpush3.bf16.msra.mxu1 %v2384_v49 }
 0x111   :  { %2386 = vmatprep.subr.bf16.mxu1 %v2597_v0 }
 0x113   :  { %2207 = vmatmul.mubr.msk.f32.gmra.mrb[8].mxu1 %vm161_vm3, %v157_v43 }
 0x114   :  { %2209 = vmatprep.mubr.msk.f32.mxu1 %vm2598_vm0, %v2599_v1  ;;  %2388 = vmatpush3.bf16.msra.mxu1 %v2387_v52 }
 0x115   :  { %2389 = vmatprep.subr.bf16.mxu1 %v2597_v0 }
 0x117   :  { %2210 = vmatmul.mubr.msk.f32.gmra.mrb[10].mxu1 %vm161_vm3, %v158_v46 }
 0x118   :  { %2224 = vmatprep.mubr.msk.f32.mxu1 %vm2598_vm0, %v2599_v1  ;;  %2391 = vmatpush3.bf16.msra.mxu1 %v2390_v55  ;;  %v2797_v55 = vsub.s32 2, %v2672_v15 }
 0x119   :  { %2392 = vmatprep.subr.bf16.mxu1 %v2597_v0 }
 0x1d6   :  { %v2715_v57 = vpop.f32.mrb[0].mxu1 }
 0x1d7   :  { %v2192_v58 = vpop.f32.mrb[1].mxu1 }
 0x1da   :  { %v2717_v59 = vpop.f32.mrb[2].mxu1 }
 0x1db   :  { %v2195_v60 = vpop.f32.mrb[3].mxu1 }
 0x1de   :  { %v2719_v61 = vpop.f32.mrb[4].mxu1 }
 0x1df   :  { %v2198_v62 = vpop.f32.mrb[5].mxu1 }
 0x1e2   :  { %v2721_v63 = vpop.f32.mrb[6].mxu1 }
 0x1e3   :  { %v2205_v2 = vpop.f32.mrb[7].mxu1  ;;  %2225 = vmatmul.mubr.msk.f32.vlgmr.msra.gmra.mrb[12].mxu1 %vm3189_vm7, %v2721_v63 }
 0x1e4   :  { %2227 = vmatprep.mubr.msk.f32.mxu1 %vm2598_vm0, %v2599_v1 }
 0x1e6   :  { %v2727_v3 = vpop.f32.mrb[8].mxu1 }
 0x1e7   :  { %v2396_v4 = vpack.c.bf16 %v2727_v3, %v2721_v63  ;;  %v2208_v5 = vpop.f32.mrb[9].mxu1  ;;  %2228 = vmatmul.mubr.msk.f32.gmra.mrb[14].mxu1 %vm3189_vm7, %v2727_v3  ;;  %v2735_v6 = vpack.i.bf16 %v2727_v3, %v2721_v63 }
 0x1e8   :  { %2230 = vmatprep.mubr.msk.f32.mxu1 %vm2598_vm0, %v2599_v1  ;;  %v2803_v5 = vld [vmem:[%s3186_s1 + $0x30] sm:$0xff] }
 0x1e9   :  { %vm607_vm1 = vcmp.gt.f32.partialorder %v2803_v5, 0.0 }
 0x1ea   :  { %v2739_v7 = vpop.f32.mrb[10].mxu1 }
 0x1eb   :  { %v2211_v11 = vpop.f32.mrb[11].mxu1  ;;  %2231 = vmatmul.mubr.msk.f32.gmra.mrb[16].mxu1 %vm3189_vm7, %v2739_v7 }
 0x1ec   :  { %2239 = vmatprep.mubr.msk.f32.mxu1 %vm2598_vm0, %v2599_v1 }
 0x2b6   :  { %v444_v13 = vpop.f32.mrb[12].mxu1 }
 0x2b7   :  { %509 = vperm.xlu1 %2463, %v444_v13   ;;  %461 = vrot.lane.b32.xlu0 %v444_v13, %s2602_s4  ;;  %v2226_v14 = vpop.f32.mrb[13].mxu1 }
 0x2ba   :  { %v449_v20 = vpop.f32.mrb[14].mxu1 }
 0x2bb   :  { %2465 = vset.pattern.permute.xlu1 %v2603_v21  ;;  %463 = vrot.lane.b32.xlu0 %v449_v20, %s2602_s4  ;;  %v2229_v22 = vpop.f32.mrb[15].mxu1 }
 0x2bc   :  { %611 = vperm.xlu1 %2465, %v444_v13  }
 0x2be   :  { %v454_v23 = vpop.f32.mrb[16].mxu1 }
 0x2bf   :  { %561 = vperm.xlu0 %2464, %v444_v13   ;;  %v2232_v24 = vpop.f32.mrb[17].mxu1 }
 0x2c0   :  { %2466 = vset.pattern.permute.xlu1 %v2600_v56 }
 0x2c1   :  { %513 = vperm.xlu1 %2466, %v449_v20  }
 0x2c3   :  { %565 = vperm.xlu0 %2464, %v449_v20  }
 0x2c5   :  { %465 = vrot.lane.b32.xlu1 %v454_v23, %s2602_s4 }
 0x2c7   :  { %2467 = vset.pattern.permute.xlu0 %v2603_v21 }
 0x2c8   :  { %615 = vperm.xlu0 %2467, %v449_v20   ;;  %v2811_v20 = vld [vmem:[%s3186_s1 + $0x20] sm:$0xff] }
 0x2c9   :  { %517 = vperm.xlu1 %2466, %v454_v23   ;;  %vm558_vm5 = vcmp.gt.f32.partialorder %v2811_v20, 0.0 }
 0x2cd   :  { %2468 = vset.pattern.permute.xlu1 %v2601_v12 }
 0x2ce   :  { %569 = vperm.xlu1 %2468, %v454_v23  }
 0x2d2   :  { %2469 = vset.pattern.permute.xlu1 %v2603_v21 }
 0x2d3   :  { %619 = vperm.xlu1 %2469, %v454_v23  }
 0x329   :  { %v462_v25 = vpop.permute.xlu0 %461 }
 0x32a   :  { %470 = vxpose.xlu0.b32.start [1/3] (short) (narrow) %v462_v25, 8 }
 0x32d   :  { %v464_v26 = vpop.permute.xlu0 %463 }
 0x32e   :  { %471 = vxpose.xlu0.b32.cont [2/3] (short) (narrow) %v464_v26, 8 }
 0x336   :  { %v510_v27 = vpop.permute.xlu1 %509 }
 0x33b   :  { %v612_v28 = vpop.permute.xlu1 %611 }
 0x33e   :  { %v562_v31 = vpop.permute.xlu0 %561 }
 0x340   :  { %v514_v29 = vpop.permute.xlu1 %513 }
 0x342   :  { %v566_v32 = vpop.permute.xlu0 %565 }
 0x344   :  { %v466_v30 = vpop.permute.xlu1 %465 }
 0x345   :  { %472 = vxpose.xlu0.b32.end [3/3] (short) (narrow) %v466_v30, 8 }
 0x347   :  { %v616_v33 = vpop.permute.xlu0 %615 }
 0x348   :  { %v518_v11 = vpop.permute.xlu1 %517 }
 0x34d   :  { %v570_v26 = vpop.permute.xlu1 %569 }
 0x3bd   :  { %v486_v34 = vpop.trf.xlu0 }
 0x3be   :  { %v523_v35 = vrot.slane %v486_v34, %v2675_v16  ;;  %v575_v36 = vrot.slane %v486_v34, %v2680_v18  ;;  %v625_v58 = vrot.slane %v486_v34, %v2797_v55 }
 0x3c0   :  { %v525_v39 = vadd.f32 %v523_v35, %v514_v29  ;;  %v524_v40 = vadd.f32 %v523_v35, %v510_v27  ;;  %v576_v41 = vadd.f32 %v575_v36, %v562_v31  ;;  %v626_v60 = vadd.f32 %v625_v58, %v612_v28  ;;  %v2822_v27 = vld [vmem:[%s3186_s1 + $0x10] sm:$0xf] }
 0x3c1   :  { %v577_v2 = vadd.f32 %v575_v36, %v566_v32  ;;  %v526_v14 = vadd.f32 %v523_v35, %v518_v11  ;;  %v627_v25 = vadd.f32 %v625_v58, %v616_v33  ;;  %v578_v32 = vadd.f32 %v575_v36, %v570_v26  ;;  %v2834_v33 = vld [vmem:[%s3186_s1 + $0x38] sm:$0xff]  ;;  %v620_v35 = vpop.permute.xlu1 %619 }
 0x3c2   :  { %vm528_vm10 = vcmp.gt.f32.partialorder %v525_v39, 0.0  ;;  %v531_v43 = vmul.f32 0.2, %v525_v39  ;;  %vm527_vm11 = vcmp.gt.f32.partialorder %v524_v40, 0.0  ;;  %v530_v44 = vmul.f32 0.2, %v524_v40 }
 0x3c3   :  { %vm579_vm13 = vcmp.gt.f32.partialorder %v576_v41, 0.0  ;;  %v582_v45 = vmul.f32 0.2, %v576_v41  ;;  %v632_v62 = vmul.f32 0.2, %v626_v60  ;;  %vm629_vm15 = vcmp.gt.f32.partialorder %v626_v60, 0.0 }
 0x3c4   :  { %v2773_v46 = vsel %vm528_vm10, %v525_v39, %v531_v43  ;;  %v2775_v47 = vsel %vm527_vm11, %v524_v40, %v530_v44  ;;  %vm580_vm4 = vcmp.gt.f32.partialorder %v577_v2, 0.0  ;;  %v532_v24 = vmul.f32 0.2, %v526_v14  ;;  %v2846_v43 = vld [vmem:[%s3186_s1 + $0x28] sm:$0xf] }
 0x3c5   :  { %v537_v48 = vsel %vm506_vm8, %v2773_v46, -1e+30  ;;  %v536_v49 = vsel %vm505_vm9, %v2775_v47, -1e+30  ;;  %v2784_v50 = vsel %vm579_vm13, %v576_v41, %v582_v45  ;;  %v2806_v13 = vsel %vm629_vm15, %v626_v60, %v632_v62 }
 0x3c6   :  { %v543_v51 = vsel %vm539_vm12, %v537_v48, -inf  ;;  %v540_v52 = vsel %vm539_vm12, %v536_v49, -inf  ;;  %v588_v53 = vsel %vm557_vm14, %v2784_v50, -1e+30  ;;  %v638_v22 = vsel %vm607_vm1, %v2806_v13, -1e+30 }
 0x3c7   :  { %544 = vmax.xlane.f32.xlu0 %v543_v51  ;;  %541 = vmax.xlane.f32.xlu1 %v540_v52  ;;  %v591_v54 = vsel %vm539_vm12, %v588_v53, -inf  ;;  %vm529_vm6 = vcmp.gt.f32.partialorder %v526_v14, 0.0  ;;  %v641_v28 = vsel %vm539_vm12, %v638_v22, -inf  ;;  %vm507_vm10 = vcmp.gt.f32.partialorder %v2822_v27, 0.0  ;;  %v2858_v51 = vld [vmem:[%s3186_s1 + $0x40] sm:$0xf] }
 0x3c8   :  { %v2829_v30 = vsel %vm529_vm6, %v526_v14, %v532_v24  ;;  %v633_v31 = vmul.f32 0.2, %v627_v25  ;;  %vm630_vm11 = vcmp.gt.f32.partialorder %v627_v25, 0.0  ;;  %vm546_vm13 = vcmask 158720  }
 0x3c9   :  { %v538_v39 = vsel %vm507_vm10, %v2829_v30, -1e+30  ;;  %vm608_vm15 = vcmp.gt.f32.partialorder %v2834_v33, 0.0  ;;  %v584_v36 = vmul.f32 0.2, %v578_v32  ;;  %v628_v41 = vadd.f32 %v625_v58, %v620_v35 }
 0x3ca   :  { %v2841_v40 = vsel %vm630_vm11, %v627_v25, %v633_v31  ;;  %v547_v44 = vsel %vm546_vm13, %v538_v39, -inf  ;;  %vm559_vm6 = vcmp.gt.f32.partialorder %v2846_v43, 0.0  ;;  %vm3191_vm7 = vcmp.gt.f32.partialorder %v2858_v51, 0.0 }
 0x3cb   :  { %592 = vmax.xlane.f32.xlu1 %v591_v54  ;;  %v639_v45 = vsel %vm608_vm15, %v2841_v40, -1e+30  ;;  %v634_v49 = vmul.f32 0.2, %v628_v41  ;;  %vm631_vm11 = vcmp.gt.f32.partialorder %v628_v41, 0.0 }
 0x3cc   :  { %v644_v52 = vsel %vm539_vm12, %v639_v45, -inf }
 0x3cd   :  { %v2865_v54 = vsel %vm631_vm11, %v628_v41, %v634_v49 }
 0x3ce   :  { %v640_v60 = vsel %vm3191_vm7, %v2865_v54, -1e+30 }
 0x3cf   :  { %v647_v62 = vsel %vm546_vm13, %v640_v60, -inf }
 0x3dc   :  { %2471 = vrot.lane.b32.xlu1 %v2735_v6, %s2604_s11 }
 0x3dd   :  { %2476 = vrot.lane.b32.xlu0 %v2735_v6, %s2605_s12  ;;  %v583_v6 = vmul.f32 0.2, %v577_v2 }
 0x3df   :  { %v2817_v23 = vsel %vm580_vm4, %v577_v2, %v583_v6  ;;  %vm581_vm4 = vcmp.gt.f32.partialorder %v578_v32, 0.0 }
 0x3e0   :  { %v589_v29 = vsel %vm558_vm5, %v2817_v23, -1e+30  ;;  %v2853_v48 = vsel %vm581_vm4, %v578_v32, %v584_v36 }
 0x3e1   :  { %v594_v34 = vsel %vm539_vm12, %v589_v29, -inf  ;;  %v590_v53 = vsel %vm559_vm6, %v2853_v48, -1e+30 }
 0x3e2   :  { %v597_v58 = vsel %vm546_vm13, %v590_v53, -inf }
 0x400   :  { %642 = vmax.xlane.f32.xlu1 %v641_v28 }
 0x404   :  { %595 = vmax.xlane.f32.xlu1 %v594_v34 }
 0x408   :  { %548 = vmax.xlane.f32.xlu1 %v547_v44 }
 0x40c   :  { %645 = vmax.xlane.f32.xlu1 %v644_v52 }
 0x410   :  { %598 = vmax.xlane.f32.xlu1 %v597_v58 }
 0x414   :  { %648 = vmax.xlane.f32.xlu1 %v647_v62 }
 0x425   :  { %711 = vrot.lane.b32.xlu1 %v2739_v7, %s2604_s11 }
 0x429   :  { %926 = vrot.lane.b32.xlu1 %v2739_v7, %s2605_s12 }
 0x454   :  { %v542_v2 = vpop.xlane.xlu1 %541  ;;  %v545_v36 = vpop.xlane.xlu0 %544 }
 0x455   :  { %v550_v25 = vmax.f32 %v542_v2, -1e+30  ;;  %v551_v52 = vmax.f32 %v545_v36, -1e+30 }
 0x458   :  { %v593_v11 = vpop.xlane.xlu1 %592 }
 0x459   :  { %v600_v26 = vmax.f32 %v550_v25, %v593_v11 }
 0x45c   :  { %v2472_v6 = vpop.permute.xlu1 %2471 }
 0x45d   :  { %v2474_v14 = vunpack.i.h.bf16 %v2472_v6  ;;  %v2473_v22 = vunpack.i.l.bf16 %v2472_v6 }
 0x45f   :  { %v2393_v24 = vpack.c.bf16 %v2474_v14, %v2473_v22 }
 0x461   :  { %2394 = vmatpush3.bf16.msra.mxu1 %v2393_v24 }
 0x462   :  { %2237 = vmatprep.subr.mxu1 %v2599_v1 }
 0x48d   :  { %v643_v28 = vpop.xlane.xlu1 %642 }
 0x48e   :  { %v650_v29 = vmax.f32 %v600_v26, %v643_v28 }
 0x490   :  { %vm653_vm4 = vcmp.gt.f32.partialorder %v650_v29, -5e+29 }
 0x491   :  { %v656_v31 = vsel %vm653_vm4, %v650_v29, 0.0  ;;  %v596_v32 = vpop.xlane.xlu1 %595  ;;  %vm3190_vm4 = vcmask 1043456  }
 0x492   :  { %v659_v34 = vsub.f32 %v2775_v47, %v656_v31  ;;  %v683_v35 = vsub.f32 %v2784_v50, %v656_v31  ;;  %v898_v39 = vsub.f32 %v2806_v13, %v656_v31  ;;  %v601_v53 = vmax.f32 %v551_v52, %v596_v32 }
 0x494   :  { %v662_v41 = vmul.f32 1.442695, %v659_v34  ;;  %v686_v44 = vmul.f32 1.442695, %v683_v35  ;;  %v901_v45 = vmul.f32 1.442695, %v898_v39 }
 0x495   :  { %v549_v49 = vpop.xlane.xlu1 %548 }
 0x496   :  { %2507 = vpow2.f32 %v662_v41  ;;  %v552_v47 = vmax.f32 %v549_v49, -1e+30 }
 0x497   :  { %2509 = vpow2.f32 %v686_v44 }
 0x498   :  { %2511 = vpow2.f32 %v901_v45 }
 0x499   :  { %v646_v58 = vpop.xlane.xlu1 %645 }
 0x49a   :  { %v651_v60 = vmax.f32 %v601_v53, %v646_v58 }
 0x49c   :  { %vm654_vm11 = vcmp.gt.f32.partialorder %v651_v60, -5e+29 }
 0x49d   :  { %v657_v62 = vsel %vm654_vm11, %v651_v60, 0.0  ;;  %v599_v2 = vpop.xlane.xlu1 %598 }
 0x49e   :  { %v660_v50 = vsub.f32 %v2773_v46, %v657_v62  ;;  %v684_v13 = vsub.f32 %v2817_v23, %v657_v62  ;;  %v899_v11 = vsub.f32 %v2841_v40, %v657_v62  ;;  %v602_v25 = vmax.f32 %v552_v47, %v599_v2  ;;  %v2477_v62 = vpop.permute.xlu0 %2476 }
 0x4a0   :  { %v2508_v6 = vpop.eup %2507  ;;  %v664_v14 = vmul.f32 1.442695, %v660_v50  ;;  %v688_v22 = vmul.f32 1.442695, %v684_v13  ;;  %v903_v24 = vmul.f32 1.442695, %v899_v11  ;;  %v2479_v11 = vunpack.i.h.bf16 %v2477_v62 }
 0x4a1   :  { %v2510_v26 = vpop.eup %2509  ;;  %v649_v28 = vpop.xlane.xlu1 %648  ;;  %v2885_v29 = vsel %vm505_vm9, %v2508_v6, 0.0  ;;  %v2478_v6 = vunpack.i.l.bf16 %v2477_v62  ;;  %v1079_v62 = vld [vmem:[#allocation2 + $0x70] sm:$0xff] }
 0x4a2   :  { %v2512_v31 = vpop.eup %2511  ;;  %2513 = vpow2.f32 %v664_v14  ;;  %v652_v32 = vmax.f32 %v602_v25, %v649_v28  ;;  %v692_v46 = vsel %vm557_vm14, %v2510_v26, 0.0  ;;  %v671_v23 = vsel %vm539_vm12, %v2885_v29, 0.0 }
 0x4a3   :  { %2515 = vpow2.f32 %v688_v22  ;;  %v695_v40 = vsel %vm539_vm12, %v692_v46, 0.0  ;;  %672 = vadd.xlane.f32.xlu1 %v671_v23  ;;  %v2894_v34 = vsel %vm607_vm1, %v2512_v31, 0.0  ;;  %v2399_v26 = vpack.c.bf16 %v2479_v11, %v2478_v6 }
 0x4a4   :  { %2517 = vpow2.f32 %v903_v24  ;;  %vm655_vm11 = vcmp.gt.f32.partialorder %v652_v32, -5e+29  ;;  %696 = vadd.xlane.f32.xlu0 %v695_v40  ;;  %v910_v45 = vsel %vm539_vm12, %v2894_v34, 0.0 }
 0x4a5   :  { %v658_v35 = vsel %vm655_vm11, %v652_v32, 0.0  ;;  %v712_v39 = vpop.permute.xlu1 %711 }
 0x4a6   :  { %v661_v36 = vsub.f32 %v2829_v30, %v658_v35  ;;  %v685_v41 = vsub.f32 %v2853_v48, %v658_v35  ;;  %v900_v44 = vsub.f32 %v2865_v54, %v658_v35  ;;  %2238 = vmatpush3.msk.msra.mxu1 %vm3190_vm4, %v712_v39 }
 0x4a7   :  { %911 = vadd.xlane.f32.xlu1 %v910_v45  ;;  %2240 = vmatmul.mubr.msk.f32.vlgmr.msra.gmra.mrb[18].mxu1 %vm539_vm12, %v692_v46 }
 0x4a8   :  { %v666_v49 = vmul.f32 1.442695, %v661_v36  ;;  %v690_v52 = vmul.f32 1.442695, %v685_v41  ;;  %v905_v53 = vmul.f32 1.442695, %v900_v44  ;;  %2395 = vmatprep.subr.bf16.mxu1 %v2597_v0  ;;  %2242 = vmatprep.mubr.msk.f32.mxu1 %vm2598_vm0, %v2599_v1 }
 0x4a9   :  { %2397 = vmatpush3.bf16.msra.mxu1 %v2396_v4  ;;  %v927_v31 = vpop.permute.xlu1 %926 }
 0x4aa   :  { %2519 = vpow2.f32 %v666_v49  ;;  %2252 = vmatprep.subr.mxu1 %v2599_v1 }
 0x4ab   :  { %2521 = vpow2.f32 %v690_v52 }
 0x4ac   :  { %v2514_v30 = vpop.eup %2513  ;;  %2523 = vpow2.f32 %v905_v53 }
 0x4ad   :  { %v2516_v48 = vpop.eup %2515  ;;  %2253 = vmatpush3.msk.msra.mxu1 %vm3190_vm4, %v2739_v7  ;;  %v669_v54 = vsel %vm506_vm8, %v2514_v30, 0.0 }
 0x4ae   :  { %v2518_v58 = vpop.eup %2517  ;;  %v693_v60 = vsel %vm558_vm5, %v2516_v48, 0.0  ;;  %v674_v63 = vsel %vm539_vm12, %v669_v54, 0.0  ;;  %2398 = vmatprep.subr.bf16.mxu1 %v2597_v0 }
 0x4af   :  { %2243 = vmatmul.mubr.msk.f32.gmra.mrb[20].mxu1 %vm539_vm12, %v693_v60  ;;  %v908_v3 = vsel %vm608_vm15, %v2518_v58, 0.0  ;;  %675 = vadd.xlane.f32.xlu1 %v674_v63  ;;  %v698_v7 = vsel %vm539_vm12, %v693_v60, 0.0 }
 0x4b0   :  { %v913_v4 = vsel %vm539_vm12, %v908_v3, 0.0  ;;  %2245 = vmatprep.mubr.msk.f32.mxu1 %vm2598_vm0, %v2599_v1 }
 0x4b1   :  { %914 = vadd.xlane.f32.xlu0 %v913_v4 }
 0x4b3   :  { %699 = vadd.xlane.f32.xlu1 %v698_v7 }
 0x4b4   :  { %v2520_v2 = vpop.eup %2519 }
 0x4b5   :  { %v2522_v47 = vpop.eup %2521  ;;  %v670_v50 = vsel %vm507_vm10, %v2520_v2, 0.0  ;;  %v1080_v2 = vld [vmem:[#allocation2 + $0x78] sm:$0xff] }
 0x4b6   :  { %v2524_v13 = vpop.eup %2523  ;;  %v694_v14 = vsel %vm559_vm6, %v2522_v47, 0.0  ;;  %v677_v22 = vsel %vm546_vm13, %v670_v50, 0.0  ;;  %v2402_v47 = vpack.c.bf16 %v1080_v2, %v1079_v62 }
 0x4b7   :  { %2246 = vmatmul.mubr.msk.f32.gmra.mrb[22].mxu1 %vm539_vm12, %v694_v14  ;;  %v701_v24 = vsel %vm546_vm13, %v694_v14, 0.0  ;;  %678 = vadd.xlane.f32.xlu1 %v677_v22  ;;  %v909_v25 = vsel %vm3191_vm7, %v2524_v13, 0.0  ;;  %v1056_v14 = vsub.s32 4, %v2672_v15  ;;  %v254_v22 = vrot.slane %v2677_v17, %v2797_v55 }
 0x4b8   :  { %702 = vadd.xlane.f32.xlu0 %v701_v24  ;;  %2254 = vmatprep.mubr.msk.f32.mxu1 %vm2598_vm0, %v2599_v1  ;;  %v916_v28 = vsel %vm546_vm13, %v909_v25, 0.0 }
 0x4b9   :  { %2403 = vmatpush3.bf16.msra.mxu0 %v2402_v47  ;;  %v1057_v24 = vrot.slane %v2677_v17, %v1056_v14 }
 0x4ba   :  { %2404 = vmatprep.subr.bf16.mxu0 %v2597_v0 }
 0x4bb   :  { %2255 = vmatmul.mubr.msk.f32.vlgmr.msra.gmra.mrb[18].mxu1 %vm539_vm12, %v2885_v29  ;;  %917 = vadd.xlane.f32.xlu1 %v916_v28  ;;  %v2606_v29 = vmov 32   ;;  %v2974_v28 = vadd.f32 %v254_v22, %v2715_v57  ;;  %v1173_v57 = vld [vmem:[#allocation2 + $0x98] sm:$0xff] }
 0x4bc   :  { %2400 = vmatpush3.bf16.msra.mxu1 %v2399_v26  ;;  %2257 = vmatprep.mubr.msk.f32.mxu1 %vm2598_vm0, %v2599_v1 }
 0x4bd   :  { %2267 = vmatprep.subr.mxu1 %v2599_v1  ;;  %2480 = vset.pattern.permute.xlu0 %v2606_v29 }
 0x4be   :  { %2481 = vset.pattern.permute.xlu1 %v2606_v29 }
 0x4bf   :  { %2258 = vmatmul.mubr.msk.f32.gmra.mrb[20].mxu1 %vm539_vm12, %v669_v54 }
 0x4c0   :  { %2268 = vmatpush3.msk.msra.mxu1 %vm3190_vm4, %v927_v31  ;;  %2260 = vmatprep.mubr.msk.f32.mxu1 %vm2598_vm0, %v2599_v1 }
 0x4c3   :  { %2261 = vmatmul.mubr.msk.f32.gmra.mrb[22].mxu1 %vm539_vm12, %v670_v50 }
 0x4c4   :  { %2269 = vmatprep.mubr.msk.f32.mxu1 %vm2598_vm0, %v2599_v1 }
 0x4c7   :  { %2270 = vmatmul.mubr.msk.f32.vlgmr.msra.gmra.mrb[18].mxu1 %vm539_vm12, %v2894_v34 }
 0x4c8   :  { %2272 = vmatprep.mubr.msk.f32.mxu1 %vm2598_vm0, %v2599_v1 }
 0x4cb   :  { %2273 = vmatmul.mubr.msk.f32.gmra.mrb[20].mxu1 %vm539_vm12, %v908_v3 }
 0x4cc   :  { %2275 = vmatprep.mubr.msk.f32.mxu1 %vm2598_vm0, %v2599_v1 }
 0x4cf   :  { %2276 = vmatmul.mubr.msk.f32.gmra.mrb[22].mxu1 %vm539_vm12, %v909_v25 }
 0x530   :  { %v673_v32 = vpop.xlane.xlu1 %672 }
 0x531   :  { %v697_v46 = vpop.xlane.xlu0 %696 }
 0x532   :  { %v704_v23 = vadd.f32 %v697_v46, %v673_v32  ;;  %v257_v46 = vsub.s32 3, %v2672_v15 }
 0x534   :  { %v912_v40 = vpop.xlane.xlu1 %911 }
 0x535   :  { %v919_v35 = vadd.f32 %v912_v40, %v704_v23  ;;  %v1170_v40 = vld [vmem:[#allocation2 + $0x80] sm:$0xff] }
 0x537   :  { %2525 = vrcp.f32 %v919_v35  ;;  %vm1024_vm11 = vcmp.gt.f32.partialorder %v919_v35, 0.0  ;;  %v1171_v35 = vld [vmem:[#allocation2 + $0x88] sm:$0xff] }
 0x53c   :  { %v676_v39 = vpop.xlane.xlu1 %675 }
 0x53e   :  { %v915_v34 = vpop.xlane.xlu0 %914 }
 0x540   :  { %v700_v36 = vpop.xlane.xlu1 %699 }
 0x541   :  { %v2526_v41 = vpop.eup %2525  ;;  %v705_v44 = vadd.f32 %v700_v36, %v676_v39  ;;  %v258_v36 = vrot.slane %v2677_v17, %v257_v46 }
 0x542   :  { %v1030_v45 = vmul.f32 %v2526_v41, %v2649_v8 }
 0x543   :  { %v920_v49 = vadd.f32 %v915_v34, %v705_v44  ;;  %v2405_v44 = vpack.c.bf16 %v1171_v35, %v1170_v40 }
 0x544   :  { %v679_v52 = vpop.xlane.xlu1 %678  ;;  %v1033_v53 = vsel %vm1024_vm11, %v1030_v45, 0.0  ;;  %v1172_v45 = vld [vmem:[#allocation2 + $0x90] sm:$0xff]  ;;  %vm3192_vm11 = vcmask 392192  }
 0x545   :  { %2527 = vrcp.f32 %v920_v49  ;;  %v703_v30 = vpop.xlane.xlu0 %702  ;;  %1038 = vperm.xlu0 %2480, %v1033_v53   ;;  %vm1025_vm4 = vcmp.gt.f32.partialorder %v920_v49, 0.0  ;;  %v260_v53 = vsel %vm41_vm2, %v254_v22, %v258_v36 }
 0x546   :  { %v706_v48 = vadd.f32 %v703_v30, %v679_v52 }
 0x548   :  { %v918_v54 = vpop.xlane.xlu1 %917 }
 0x549   :  { %v921_v58 = vadd.f32 %v918_v54, %v706_v48  ;;  %2483 = vset.pattern.permute.xlu0 %v2601_v12  ;;  %v2408_v48 = vpack.c.bf16 %v1173_v57, %v1172_v45 }
 0x54b   :  { %2529 = vrcp.f32 %v921_v58  ;;  %vm1026_vm7 = vcmp.gt.f32.partialorder %v921_v58, 0.0  ;;  %v1174_v58 = vld [vmem:[#allocation2 + $0xa0] sm:$0xff] }
 0x54f   :  { %v2528_v60 = vpop.eup %2527 }
 0x550   :  { %v1031_v63 = vmul.f32 %v2528_v60, %v2658_v9  ;;  %v1175_v60 = vld [vmem:[#allocation2 + $0xa8] sm:$0xff] }
 0x552   :  { %v1034_v3 = vsel %vm1025_vm4, %v1031_v63, 0.0 }
 0x553   :  { %1043 = vperm.xlu1 %2481, %v1034_v3  }
 0x555   :  { %v2530_v8 = vpop.eup %2529 }
 0x556   :  { %v1032_v4 = vmul.f32 %v2530_v8, %v2666_v10 }
 0x558   :  { %v1035_v7 = vsel %vm1026_vm7, %v1032_v4, 0.0 }
 0x559   :  { %1048 = vperm.xlu1 %2481, %v1035_v7   ;;  %v2411_v7 = vpack.c.bf16 %v1175_v60, %v1174_v58 }
 0x55d   :  { %267 = vrot.lane.b32.xlu1 %v2717_v59, %s2604_s11 }
 0x55e   :  { %2482 = vset.pattern.permute.xlu1 %v2600_v56 }
 0x561   :  { %269 = vrot.lane.b32.xlu1 %v2719_v61, %s2604_s11 }
 0x59a   :  { %v1007_v9 = vpop.f32.mrb[18].mxu1 }
 0x59b   :  { %v2271_v50 = vpop.f32.mrb[19].mxu1 }
 0x59e   :  { %v1012_v10 = vpop.f32.mrb[20].mxu1 }
 0x59f   :  { %v2274_v13 = vpop.f32.mrb[21].mxu1 }
 0x5a2   :  { %v1017_v11 = vpop.f32.mrb[22].mxu1 }
 0x5a3   :  { %v2277_v6 = vpop.f32.mrb[23].mxu1 }
 0x5c4   :  { %v1039_v25 = vpop.permute.xlu0 %1038 }
 0x5c5   :  { %v1051_v26 = vmul.f32 %v1039_v25, %v1007_v9 }
 0x5c7   :  { %v1058_v31 = vadd.f32 %v1057_v24, %v1051_v26 }
 0x5c9   :  { %v1061_v61 = vadd.f32 %v1058_v31, %v2974_v28 }
 0x5cb   :  { %v1067_v32 = vmul.f32 1.442695, %v1061_v61  ;;  %vm1064_vm7 = vcmp.gt.f32.partialorder %v1061_v61, 0.0 }
 0x5cd   :  { %2531 = vpow2.f32 %v1067_v32 }
 0x5d2   :  { %v1044_v23 = vpop.permute.xlu1 %1043 }
 0x5d3   :  { %v1052_v49 = vmul.f32 %v1044_v23, %v1012_v10 }
 0x5d5   :  { %v1059_v63 = vadd.f32 %v1057_v24, %v1052_v49 }
 0x5d7   :  { %v2532_v39 = vpop.eup %2531 }
 0x5d8   :  { %v2056_v41 = vadd.f32 -1.0, %v2532_v39  ;;  %v1049_v34 = vpop.permute.xlu1 %1048 }
 0x5d9   :  { %v1053_v17 = vmul.f32 %v1049_v34, %v1017_v11 }
 0x5da   :  { %v1076_v52 = vsel %vm1064_vm7, %v1061_v61, %v2056_v41  ;;  %vm3193_vm7 = vmmov %vm3192_vm11 }
 0x5db   :  { %2283 = vmatmul.mubr.msk.f32.vlgmr.msra.gmra.mrb[6].mxu0 %vm161_vm3, %v1076_v52  ;;  %v1060_v62 = vadd.f32 %v1057_v24, %v1053_v17 }
 0x5dc   :  { %v268_v30 = vpop.permute.xlu1 %267  ;;  %2285 = vmatprep.mubr.msk.f32.mxu0 %vm2598_vm0, %v2599_v1  ;;  %2406 = vmatpush3.bf16.msra.mxu0 %v2405_v44 }
 0x5dd   :  { %v275_v54 = vsel %vm41_vm2, %v2717_v59, %v268_v30  ;;  %2407 = vmatprep.subr.bf16.mxu0 %v2597_v0 }
 0x5de   :  { %v2988_v3 = vadd.f32 %v275_v54, %v260_v53 }
 0x5e0   :  { %v270_v8 = vpop.permute.xlu1 %269  ;;  %v1062_v4 = vadd.f32 %v1059_v63, %v2988_v3  ;;  %2409 = vmatpush3.bf16.msra.mxu0 %v2408_v48 }
 0x5e1   :  { %v279_v2 = vadd.f32 %v270_v8, %v258_v36  ;;  %2410 = vmatprep.subr.bf16.mxu0 %v2597_v0 }
 0x5e2   :  { %v1069_v47 = vmul.f32 1.442695, %v1062_v4  ;;  %vm1065_vm2 = vcmp.gt.f32.partialorder %v1062_v4, 0.0 }
 0x5e3   :  { %v1063_v9 = vadd.f32 %v1060_v62, %v279_v2 }
 0x5e4   :  { %2533 = vpow2.f32 %v1069_v47  ;;  %2412 = vmatpush3.bf16.msra.mxu0 %v2411_v7 }
 0x5e5   :  { %v1071_v19 = vmul.f32 1.442695, %v1063_v9  ;;  %2413 = vmatprep.subr.bf16.mxu0 %v2597_v0  ;;  %vm1066_vm4 = vcmp.gt.f32.partialorder %v1063_v9, 0.0 }
 0x5e7   :  { %2535 = vpow2.f32 %v1071_v19 }
 0x5ee   :  { %v2534_v59 = vpop.eup %2533 }
 0x5ef   :  { %v2057_v50 = vadd.f32 -1.0, %v2534_v59 }
 0x5f1   :  { %v2536_v10 = vpop.eup %2535  ;;  %v1077_v13 = vsel %vm1065_vm2, %v1062_v4, %v2057_v50  ;;  %vm3194_vm2 = vmmov %vm3193_vm7 }
 0x5f2   :  { %2286 = vmatmul.mubr.msk.f32.gmra.mrb[8].mxu0 %vm161_vm3, %v1077_v13  ;;  %v2058_v11 = vadd.f32 -1.0, %v2536_v10 }
 0x5f3   :  { %2288 = vmatprep.mubr.msk.f32.mxu0 %vm2598_vm0, %v2599_v1 }
 0x5f4   :  { %v1078_v6 = vsel %vm1066_vm4, %v1063_v9, %v2058_v11 }
 0x5f6   :  { %2289 = vmatmul.mubr.msk.f32.gmra.mrb[10].mxu0 %vm161_vm3, %v1078_v6 }
 0x5f7   :  { %2303 = vmatprep.mubr.msk.f32.mxu0 %vm2598_vm0, %v2599_v1 }
 0x6ae   :  { %v2999_v14 = vpop.f32.mrb[6].mxu0 }
 0x6af   :  { %v2284_v22 = vpop.f32.mrb[7].mxu0  ;;  %2304 = vmatmul.mubr.msk.f32.vlgmr.msra.gmra.mrb[12].mxu0 %vm3192_vm11, %v2999_v14 }
 0x6b0   :  { %2306 = vmatprep.mubr.msk.f32.mxu0 %vm2598_vm0, %v2599_v1 }
 0x6c5   :  { %v3005_v24 = vpop.f32.mrb[8].mxu0 }
 0x6c6   :  { %v2417_v25 = vpack.c.bf16 %v3005_v24, %v2999_v14  ;;  %v2287_v26 = vpop.f32.mrb[9].mxu0  ;;  %2307 = vmatmul.mubr.msk.f32.gmra.mrb[14].mxu0 %vm3193_vm7, %v3005_v24  ;;  %v3013_v31 = vpack.i.bf16 %v3005_v24, %v2999_v14 }
 0x6c7   :  { %2309 = vmatprep.mubr.msk.f32.mxu0 %vm2598_vm0, %v2599_v1 }
 0x6c9   :  { %v3017_v61 = vpop.f32.mrb[10].mxu0 }
 0x6ca   :  { %v2290_v32 = vpop.f32.mrb[11].mxu0  ;;  %2310 = vmatmul.mubr.msk.f32.gmra.mrb[16].mxu0 %vm3194_vm2, %v3017_v61 }
 0x6cb   :  { %2318 = vmatprep.mubr.msk.f32.mxu0 %vm2598_vm0, %v2599_v1 }
 0x782   :  { %v1251_v46 = vpop.f32.mrb[12].mxu0 }
 0x783   :  { %1353 = vperm.xlu0 %2483, %v1251_v46   ;;  %1268 = vrot.lane.b32.xlu1 %v1251_v46, %s2602_s4  ;;  %v2305_v23 = vpop.f32.mrb[13].mxu0 }
 0x799   :  { %v1256_v40 = vpop.f32.mrb[14].mxu0 }
 0x79a   :  { %1357 = vperm.xlu0 %2483, %v1256_v40   ;;  %1270 = vrot.lane.b32.xlu1 %v1256_v40, %s2602_s4  ;;  %v2308_v35 = vpop.f32.mrb[15].mxu0 }
 0x79d   :  { %v1261_v39 = vpop.f32.mrb[16].mxu0 }
 0x79e   :  { %2485 = vset.pattern.permute.xlu0 %v2603_v21  ;;  %1272 = vrot.lane.b32.xlu1 %v1261_v39, %s2602_s4  ;;  %v2311_v36 = vpop.f32.mrb[17].mxu0 }
 0x79f   :  { %1400 = vperm.xlu0 %2485, %v1256_v40  }
 0x7a2   :  { %1310 = vperm.xlu1 %2482, %v1251_v46  }
 0x7a6   :  { %1314 = vperm.xlu1 %2482, %v1256_v40  }
 0x7aa   :  { %2484 = vset.pattern.permute.xlu1 %v2603_v21 }
 0x7ab   :  { %1396 = vperm.xlu1 %2484, %v1251_v46  }
 0x7af   :  { %2486 = vset.pattern.permute.xlu1 %v2600_v56 }
 0x7b0   :  { %1318 = vperm.xlu1 %2486, %v1261_v39  }
 0x7b4   :  { %2487 = vset.pattern.permute.xlu1 %v2601_v12 }
 0x7b5   :  { %1361 = vperm.xlu1 %2487, %v1261_v39  }
 0x7b9   :  { %2488 = vset.pattern.permute.xlu1 %v2603_v21 }
 0x7ba   :  { %1404 = vperm.xlu1 %2488, %v1261_v39  }
 0x7be   :  { %2499 = vset.pattern.permute.xlu1 %v2606_v29 }
 0x7f5   :  { %v1269_v41 = vpop.permute.xlu1 %1268 }
 0x7f6   :  { %1277 = vxpose.xlu0.b32.start [1/3] (short) (narrow) %v1269_v41, 8 }
 0x802   :  { %v1354_v45 = vpop.permute.xlu0 %1353 }
 0x80c   :  { %v1271_v34 = vpop.permute.xlu1 %1270 }
 0x80d   :  { %1278 = vxpose.xlu0.b32.cont [2/3] (short) (narrow) %v1271_v34, 8 }
 0x810   :  { %v1273_v44 = vpop.permute.xlu1 %1272 }
 0x811   :  { %1279 = vxpose.xlu0.b32.end [3/3] (short) (narrow) %v1273_v44, 8 }
 0x819   :  { %v1358_v57 = vpop.permute.xlu0 %1357 }
 0x81e   :  { %v1401_v49 = vpop.permute.xlu0 %1400 }
 0x821   :  { %v1311_v56 = vpop.permute.xlu1 %1310 }
 0x825   :  { %v1315_v52 = vpop.permute.xlu1 %1314 }
 0x82a   :  { %v1397_v48 = vpop.permute.xlu1 %1396 }
 0x82f   :  { %v1319_v19 = vpop.permute.xlu1 %1318 }
 0x834   :  { %v1362_v46 = vpop.permute.xlu1 %1361 }
 0x839   :  { %v1405_v34 = vpop.permute.xlu1 %1404 }
 0x83a   :  { %2500 = vset.pattern.permute.xlu0 %v2606_v29 }
 0x889   :  { %v1293_v12 = vpop.trf.xlu0 }
 0x88a   :  { %v1324_v53 = vrot.slane %v1293_v12, %v2675_v16  ;;  %v1367_v21 = vrot.slane %v1293_v12, %v2680_v18  ;;  %v1410_v30 = vrot.slane %v1293_v12, %v2797_v55 }
 0x88c   :  { %v1368_v17 = vadd.f32 %v1367_v21, %v1354_v45  ;;  %v1325_v54 = vadd.f32 %v1324_v53, %v1311_v56  ;;  %v1326_v58 = vadd.f32 %v1324_v53, %v1315_v52  ;;  %v1411_v60 = vadd.f32 %v1410_v30, %v1397_v48 }
 0x88d   :  { %v1369_v62 = vadd.f32 %v1367_v21, %v1358_v57  ;;  %v1327_v13 = vadd.f32 %v1324_v53, %v1319_v19  ;;  %v1412_v32 = vadd.f32 %v1410_v30, %v1401_v49  ;;  %v1370_v36 = vadd.f32 %v1367_v21, %v1362_v46 }
 0x88e   :  { %vm1371_vm4 = vcmp.gt.f32.partialorder %v1368_v17, 0.0  ;;  %v1374_v63 = vmul.f32 0.2, %v1368_v17  ;;  %vm1328_vm11 = vcmp.gt.f32.partialorder %v1325_v54, 0.0  ;;  %v1331_v29 = vmul.f32 0.2, %v1325_v54 }
 0x88f   :  { %vm1329_vm7 = vcmp.gt.f32.partialorder %v1326_v58, 0.0  ;;  %v1332_v8 = vmul.f32 0.2, %v1326_v58  ;;  %v1417_v16 = vmul.f32 0.2, %v1411_v60  ;;  %vm1414_vm2 = vcmp.gt.f32.partialorder %v1411_v60, 0.0 }
 0x890   :  { %v3036_v4 = vsel %vm1371_vm4, %v1368_v17, %v1374_v63  ;;  %v3038_v7 = vsel %vm1328_vm11, %v1325_v54, %v1331_v29  ;;  %v1375_v10 = vmul.f32 0.2, %v1369_v62  ;;  %vm1372_vm4 = vcmp.gt.f32.partialorder %v1369_v62, 0.0 }
 0x891   :  { %v1380_v18 = vsel %vm557_vm14, %v3036_v4, -1e+30  ;;  %v1337_v55 = vsel %vm505_vm9, %v3038_v7, -1e+30  ;;  %v3046_v2 = vsel %vm1329_vm7, %v1326_v58, %v1332_v8  ;;  %v3053_v50 = vsel %vm1414_vm2, %v1411_v60, %v1417_v16 }
 0x892   :  { %v1383_v47 = vsel %vm539_vm12, %v1380_v18, -inf  ;;  %v1340_v9 = vsel %vm539_vm12, %v1337_v55, -inf  ;;  %v1338_v59 = vsel %vm506_vm8, %v3046_v2, -1e+30  ;;  %v1423_v6 = vsel %vm607_vm1, %v3053_v50, -1e+30 }
 0x893   :  { %1384 = vmax.xlane.f32.xlu0 %v1383_v47  ;;  %1341 = vmax.xlane.f32.xlu1 %v1340_v9  ;;  %v1343_v11 = vsel %vm539_vm12, %v1338_v59, -inf  ;;  %v3059_v22 = vsel %vm1372_vm4, %v1369_v62, %v1375_v10  ;;  %v1333_v26 = vmul.f32 0.2, %v1327_v13  ;;  %vm1330_vm11 = vcmp.gt.f32.partialorder %v1327_v13, 0.0 }
 0x894   :  { %v1426_v23 = vsel %vm539_vm12, %v1423_v6, -inf  ;;  %v1381_v40 = vsel %vm558_vm5, %v3059_v22, -1e+30  ;;  %v1418_v39 = vmul.f32 0.2, %v1412_v32  ;;  %vm1415_vm7 = vcmp.gt.f32.partialorder %v1412_v32, 0.0 }
 0x895   :  { %v3065_v35 = vsel %vm1330_vm11, %v1327_v13, %v1333_v26  ;;  %v1386_v41 = vsel %vm539_vm12, %v1381_v40, -inf  ;;  %v1376_v57 = vmul.f32 0.2, %v1370_v36  ;;  %v1413_v56 = vadd.f32 %v1410_v30, %v1405_v34 }
 0x896   :  { %v1339_v44 = vsel %vm507_vm10, %v3065_v35, -1e+30  ;;  %v1421_v45 = vsel %vm1415_vm7, %v1412_v32, %v1418_v39  ;;  %vm1373_vm2 = vcmp.gt.f32.partialorder %v1370_v36, 0.0  ;;  %vm3195_vm11 = vcmp.gt.f32.partialorder %v2858_v51, 0.0 }
 0x897   :  { %1344 = vmax.xlane.f32.xlu1 %v1343_v11  ;;  %v1346_v49 = vsel %vm546_vm13, %v1339_v44, -inf  ;;  %v1424_v52 = vsel %vm608_vm15, %v1421_v45, -1e+30  ;;  %v3074_v12 = vsel %vm1373_vm2, %v1370_v36, %v1376_v57  ;;  %v1419_v53 = vmul.f32 0.2, %v1413_v56 }
 0x898   :  { %vm1416_vm4 = vcmp.gt.f32.partialorder %v1413_v56, 0.0  ;;  %v1429_v21 = vsel %vm539_vm12, %v1424_v52, -inf  ;;  %v1382_v48 = vsel %vm559_vm6, %v3074_v12, -1e+30 }
 0x899   :  { %v3080_v17 = vsel %vm1416_vm4, %v1413_v56, %v1419_v53  ;;  %v1389_v30 = vsel %vm546_vm13, %v1382_v48, -inf  ;;  %vm2016_vm4 = vcmask 27648  }
 0x89a   :  { %v1425_v54 = vsel %vm3195_vm11, %v3080_v17, -1e+30 }
 0x89b   :  { %1427 = vmax.xlane.f32.xlu1 %v1426_v23  ;;  %v1432_v58 = vsel %vm546_vm13, %v1425_v54, -inf }
 0x89f   :  { %1387 = vmax.xlane.f32.xlu1 %v1386_v41 }
 0x8a3   :  { %1347 = vmax.xlane.f32.xlu1 %v1346_v49 }
 0x8a7   :  { %1430 = vmax.xlane.f32.xlu1 %v1429_v21 }
 0x8a9   :  { %1488 = vrot.lane.b32.xlu0 %v3017_v61, %s2604_s11 }
 0x8ab   :  { %1390 = vmax.xlane.f32.xlu1 %v1389_v30 }
 0x8af   :  { %1433 = vmax.xlane.f32.xlu1 %v1432_v58 }
 0x8c0   :  { %2490 = vrot.lane.b32.xlu1 %v3013_v31, %s2604_s11 }
 0x8c4   :  { %2495 = vrot.lane.b32.xlu1 %v3013_v31, %s2605_s12 }
 0x8c8   :  { %1696 = vrot.lane.b32.xlu1 %v3017_v61, %s2605_s12 }
 0x920   :  { %v1342_v60 = vpop.xlane.xlu1 %1341  ;;  %v1385_v8 = vpop.xlane.xlu0 %1384 }
 0x921   :  { %v1349_v63 = vmax.f32 %v1342_v60, -1e+30 }
 0x923   :  { %v1392_v16 = vmax.f32 %v1349_v63, %v1385_v8 }
 0x924   :  { %v1345_v29 = vpop.xlane.xlu1 %1344 }
 0x925   :  { %v1350_v13 = vmax.f32 %v1345_v29, -1e+30 }
 0x928   :  { %v1428_v62 = vpop.xlane.xlu1 %1427 }
 0x929   :  { %v1435_v18 = vmax.f32 %v1392_v16, %v1428_v62  ;;  %v1489_v16 = vpop.permute.xlu0 %1488 }
 0x92b   :  { %vm1438_vm7 = vcmp.gt.f32.partialorder %v1435_v18, -5e+29 }
 0x92c   :  { %v1441_v55 = vsel %vm1438_vm7, %v1435_v18, 0.0  ;;  %v1388_v47 = vpop.xlane.xlu1 %1387 }
 0x92d   :  { %v1444_v9 = vsub.f32 %v3038_v7, %v1441_v55  ;;  %v1464_v19 = vsub.f32 %v3036_v4, %v1441_v55  ;;  %v1393_v11 = vmax.f32 %v1350_v13, %v1388_v47  ;;  %v1672_v32 = vsub.f32 %v3053_v50, %v1441_v55 }
 0x92f   :  { %v1447_v59 = vmul.f32 1.442695, %v1444_v9  ;;  %v1467_v10 = vmul.f32 1.442695, %v1464_v19  ;;  %v1675_v49 = vmul.f32 1.442695, %v1672_v32 }
 0x930   :  { %v1348_v31 = vpop.xlane.xlu1 %1347 }
 0x931   :  { %2537 = vpow2.f32 %v1447_v59  ;;  %v1351_v40 = vmax.f32 %v1348_v31, -1e+30 }
 0x932   :  { %2539 = vpow2.f32 %v1467_v10 }
 0x934   :  { %v1431_v6 = vpop.xlane.xlu1 %1430 }
 0x935   :  { %v1436_v26 = vmax.f32 %v1393_v11, %v1431_v6 }
 0x937   :  { %vm1439_vm13 = vcmp.gt.f32.partialorder %v1436_v26, -5e+29 }
 0x938   :  { %v1442_v46 = vsel %vm1439_vm13, %v1436_v26, 0.0  ;;  %v1391_v23 = vpop.xlane.xlu1 %1390 }
 0x939   :  { %v1445_v39 = vsub.f32 %v3046_v2, %v1442_v46  ;;  %v1465_v7 = vsub.f32 %v3059_v22, %v1442_v46  ;;  %v1673_v4 = vsub.f32 %v1421_v45, %v1442_v46  ;;  %v1394_v57 = vmax.f32 %v1351_v40, %v1391_v23 }
 0x93b   :  { %v2538_v36 = vpop.eup %2537  ;;  %v1449_v41 = vmul.f32 1.442695, %v1445_v39  ;;  %v1469_v34 = vmul.f32 1.442695, %v1465_v7  ;;  %v1677_v44 = vmul.f32 1.442695, %v1673_v4 }
 0x93c   :  { %v2540_v56 = vpop.eup %2539  ;;  %v1434_v52 = vpop.xlane.xlu1 %1433  ;;  %v1453_v53 = vsel %vm505_vm9, %v2538_v36, 0.0  ;;  %vm3196_vm9 = vcmask 1043456  }
 0x93d   :  { %2541 = vpow2.f32 %v1449_v41  ;;  %v1437_v50 = vmax.f32 %v1394_v57, %v1434_v52  ;;  %v1473_v21 = vsel %vm557_vm14, %v2540_v56, 0.0  ;;  %v1456_v2 = vsel %vm539_vm12, %v1453_v53, 0.0  ;;  %v1830_v56 = vld [vmem:[#allocation2 + $0xb0] sm:$0xff] }
 0x93e   :  { %2543 = vpow2.f32 %v1469_v34  ;;  %v1476_v22 = vsel %vm539_vm12, %v1473_v21, 0.0  ;;  %1457 = vadd.xlane.f32.xlu1 %v1456_v2  ;;  %v2568_v34 = vld [vmem:[%s3185_s0] sm:$0xff] }
 0x93f   :  { %2545 = vpow2.f32 %v1677_v44  ;;  %vm1440_vm2 = vcmp.gt.f32.partialorder %v1437_v50, -5e+29  ;;  %1477 = vadd.xlane.f32.xlu0 %v1476_v22 }
 0x940   :  { %v1443_v45 = vsel %vm1440_vm2, %v1437_v50, 0.0  ;;  %v2491_v48 = vpop.permute.xlu1 %2490  ;;  %2547 = vpow2.f32 %v1675_v49  ;;  %v1831_v49 = vld [vmem:[#allocation2 + $0xb8] sm:$0xff] }
 0x941   :  { %v1466_v38 = vsub.f32 %v3074_v12, %v1443_v45  ;;  %v2493_v30 = vunpack.i.h.bf16 %v2491_v48  ;;  %v2492_v54 = vunpack.i.l.bf16 %v2491_v48  ;;  %v1446_v62 = vsub.f32 %v3065_v35, %v1443_v45 }
 0x942   :  { %v2422_v52 = vpack.c.bf16 %v1831_v49, %v1830_v56 }
 0x943   :  { %v1471_v58 = vmul.f32 1.442695, %v1466_v38  ;;  %v2414_v60 = vpack.c.bf16 %v2493_v30, %v2492_v54  ;;  %v1451_v37 = vmul.f32 1.442695, %v1446_v62 }
 0x944   :  { %v2496_v35 = vpop.permute.xlu1 %2495  ;;  %2423 = vmatprep.subr.bf16.mxu1 %v2422_v52 }
 0x945   :  { %2549 = vpow2.f32 %v1471_v58  ;;  %2415 = vmatpush3.bf16.msra.mxu0 %v2414_v60  ;;  %v2498_v5 = vunpack.i.h.bf16 %v2496_v35  ;;  %2425 = vmatpush3.bf16.msra.mxu1 %v2422_v52  ;;  %v1814_v58 = vsub.s32 5, %v2672_v15  ;;  %v2569_v60 = vld [vmem:[#allocation2 + $0xd0] sm:$0xff] }
 0x946   :  { %2316 = vmatprep.subr.mxu0 %v2599_v1  ;;  %2551 = vpow2.f32 %v1451_v37 }
 0x947   :  { %v2542_v42 = vpop.eup %2541 }
 0x948   :  { %v2544_v63 = vpop.eup %2543  ;;  %v1454_v29 = vsel %vm506_vm8, %v2542_v42, 0.0  ;;  %vm3197_vm8 = vmmov %vm3196_vm9  ;;  %v1697_v10 = vpop.permute.xlu1 %1696  ;;  %v1815_v42 = vrot.slane %v2569_v60, %v1814_v58 }
 0x949   :  { %v2546_v8 = vpop.eup %2545  ;;  %v1459_v18 = vsel %vm539_vm12, %v1454_v29, 0.0  ;;  %2317 = vmatpush3.msk.msra.mxu0 %vm3196_vm9, %v1489_v16  ;;  %v1474_v55 = vsel %vm558_vm5, %v2544_v63, 0.0  ;;  %vm3198_vm14 = vmmov %vm3197_vm8 }
 0x94a   :  { %v1682_v12 = vsel %vm608_vm15, %v2546_v8, 0.0  ;;  %1460 = vadd.xlane.f32.xlu1 %v1459_v18  ;;  %v2548_v47 = vpop.eup %2547  ;;  %2319 = vmatmul.mubr.msk.f32.vlgmr.msra.gmra.mrb[18].mxu0 %vm539_vm12, %v1473_v21  ;;  %v1479_v33 = vsel %vm539_vm12, %v1474_v55, 0.0 }
 0x94b   :  { %v1687_v9 = vsel %vm539_vm12, %v1682_v12, 0.0  ;;  %2416 = vmatprep.subr.bf16.mxu0 %v2597_v0  ;;  %2321 = vmatprep.mubr.msk.f32.mxu0 %vm2598_vm0, %v2599_v1  ;;  %v1681_v20 = vsel %vm607_vm1, %v2548_v47, 0.0  ;;  %vm3199_vm1 = vmmov %vm3195_vm11  ;;  %vm2014_vm11 = vcmask 31744  }
 0x94c   :  { %1688 = vadd.xlane.f32.xlu0 %v1687_v9  ;;  %2418 = vmatpush3.bf16.msra.mxu0 %v2417_v25  ;;  %v1684_v14 = vsel %vm539_vm12, %v1681_v20, 0.0  ;;  %v2497_v25 = vunpack.i.l.bf16 %v2496_v35 }
 0x94d   :  { %2331 = vmatprep.subr.mxu0 %v2599_v1 }
 0x94e   :  { %1480 = vadd.xlane.f32.xlu1 %v1479_v33  ;;  %2322 = vmatmul.mubr.msk.f32.gmra.mrb[20].mxu0 %vm539_vm12, %v1474_v55  ;;  %v2420_v59 = vpack.c.bf16 %v2498_v5, %v2497_v25 }
 0x94f   :  { %v2550_v19 = vpop.eup %2549  ;;  %2324 = vmatprep.mubr.msk.f32.mxu0 %vm2598_vm0, %v2599_v1 }
 0x950   :  { %2332 = vmatpush3.msk.msra.mxu0 %vm3197_vm8, %v3017_v61  ;;  %v1475_v24 = vsel %vm559_vm6, %v2550_v19, 0.0  ;;  %v1674_v61 = vsub.f32 %v3080_v17, %v1443_v45 }
 0x951   :  { %2419 = vmatprep.subr.bf16.mxu0 %v2597_v0  ;;  %v2552_v0 = vpop.eup %2551 }
 0x952   :  { %1685 = vadd.xlane.f32.xlu1 %v1684_v14  ;;  %2325 = vmatmul.mubr.msk.f32.gmra.mrb[22].mxu0 %vm539_vm12, %v1475_v24  ;;  %v1679_v43 = vmul.f32 1.442695, %v1674_v61  ;;  %v1455_v17 = vsel %vm507_vm10, %v2552_v0, 0.0  ;;  %v1928_v24 = vld [vmem:[#allocation2 + $0xc8] sm:$0xff] }
 0x953   :  { %2333 = vmatprep.mubr.msk.f32.mxu0 %vm2598_vm0, %v2599_v1 }
 0x954   :  { %2553 = vpow2.f32 %v1679_v43 }
 0x956   :  { %2334 = vmatmul.mubr.msk.f32.vlgmr.msra.gmra.mrb[18].mxu0 %vm539_vm12, %v1453_v53 }
 0x957   :  { %2421 = vmatpush3.bf16.msra.mxu0 %v2420_v59  ;;  %2336 = vmatprep.mubr.msk.f32.mxu0 %vm2598_vm0, %v2599_v1 }
 0x958   :  { %2346 = vmatprep.subr.mxu0 %v2599_v1 }
 0x95a   :  { %2337 = vmatmul.mubr.msk.f32.gmra.mrb[20].mxu0 %vm539_vm12, %v1454_v29 }
 0x95b   :  { %2347 = vmatpush3.msk.msra.mxu0 %vm3198_vm14, %v1697_v10  ;;  %2339 = vmatprep.mubr.msk.f32.mxu0 %vm2598_vm0, %v2599_v1 }
 0x95e   :  { %2340 = vmatmul.mubr.msk.f32.gmra.mrb[24].mxu0 %vm539_vm12, %v1455_v17  ;;  %v2554_v31 = vpop.eup %2553 }
 0x95f   :  { %2348 = vmatprep.mubr.msk.f32.mxu0 %vm2598_vm0, %v2599_v1  ;;  %v1683_v27 = vsel %vm3199_vm1, %v2554_v31, 0.0 }
 0x962   :  { %2349 = vmatmul.mubr.msk.f32.vlgmr.msra.gmra.mrb[18].mxu0 %vm539_vm12, %v1681_v20 }
 0x963   :  { %2351 = vmatprep.mubr.msk.f32.mxu0 %vm2598_vm0, %v2599_v1 }
 0x966   :  { %2352 = vmatmul.mubr.msk.f32.gmra.mrb[20].mxu0 %vm539_vm12, %v1682_v12 }
 0x967   :  { %2354 = vmatprep.mubr.msk.f32.mxu0 %vm2598_vm0, %v2599_v1  ;;  %v2567_v1 = vld [vmem:[%s3185_s0 + $0x8] sm:$0xff] }
 0x96a   :  { %2355 = vmatmul.mubr.msk.f32.gmra.mrb[26].mxu0 %vm539_vm12, %v1683_v27 }
 0x9cb   :  { %v1458_v13 = vpop.xlane.xlu1 %1457 }
 0x9cc   :  { %v1478_v6 = vpop.xlane.xlu0 %1477 }
 0x9cd   :  { %v1482_v23 = vadd.f32 %v1478_v6, %v1458_v13 }
 0x9d7   :  { %v1461_v11 = vpop.xlane.xlu1 %1460 }
 0x9d9   :  { %v1689_v46 = vpop.xlane.xlu0 %1688 }
 0x9db   :  { %v1481_v26 = vpop.xlane.xlu1 %1480 }
 0x9dc   :  { %v1483_v32 = vadd.f32 %v1481_v26, %v1461_v11 }
 0x9de   :  { %v1691_v40 = vadd.f32 %v1689_v46, %v1483_v32  ;;  %v1931_v32 = vsub.s32 7, %v2672_v15 }
 0x9df   :  { %v1686_v39 = vpop.xlane.xlu1 %1685 }
 0x9e0   :  { %2555 = vrcp.f32 %v1691_v40  ;;  %v1690_v7 = vadd.f32 %v1686_v39, %v1482_v23  ;;  %vm1793_vm0 = vcmp.gt.f32.partialorder %v1691_v40, 0.0  ;;  %v1932_v46 = vrot.slane %v2569_v60, %v1931_v32 }
 0x9e2   :  { %2557 = vrcp.f32 %v1690_v7  ;;  %vm1792_vm12 = vcmp.gt.f32.partialorder %v1690_v7, 0.0 }
 0x9ea   :  { %v2556_v4 = vpop.eup %2555 }
 0x9eb   :  { %v1797_v51 = vmul.f32 %v2567_v1, %v2556_v4 }
 0x9ec   :  { %v2558_v36 = vpop.eup %2557 }
 0x9ed   :  { %v1799_v41 = vsel %vm1793_vm0, %v1797_v51, 0.0  ;;  %v1796_v44 = vmul.f32 %v2568_v34, %v2558_v36 }
 0x9ee   :  { %1807 = vperm.xlu0 %2500, %v1799_v41  }
 0x9ef   :  { %v1798_v57 = vsel %vm1792_vm12, %v1796_v44, 0.0 }
 0x9f0   :  { %1802 = vperm.xlu1 %2499, %v1798_v57  }
 0xa25   :  { %v1579_v53 = vpop.f32.mrb[22].mxu0 }
 0xa26   :  { %v2326_v50 = vpop.f32.mrb[23].mxu0 }
 0xa31   :  { %v1669_v21 = vpop.f32.mrb[24].mxu0 }
 0xa32   :  { %v2341_v2 = vpop.f32.mrb[25].mxu0 }
 0xa35   :  { %v1777_v22 = vpop.f32.mrb[18].mxu0 }
 0xa36   :  { %v2350_v45 = vpop.f32.mrb[19].mxu0 }
 0xa39   :  { %v1782_v48 = vpop.f32.mrb[20].mxu0 }
 0xa3a   :  { %v2353_v38 = vpop.f32.mrb[21].mxu0 }
 0xa3d   :  { %v1787_v30 = vpop.f32.mrb[26].mxu0 }
 0xa3e   :  { %v2356_v54 = vpop.f32.mrb[27].mxu0 }
 0xa6d   :  { %v1808_v63 = vpop.permute.xlu0 %1807 }
 0xa6e   :  { %v1811_v29 = vmul.f32 %v1808_v63, %v1782_v48 }
 0xa6f   :  { %v1803_v8 = vpop.permute.xlu1 %1802 }
 0xa70   :  { %v1817_v16 = vadd.f32 %v1815_v42, %v1811_v29  ;;  %v1810_v62 = vmul.f32 %v1803_v8, %v1777_v22 }
 0xa72   :  { %v1819_v18 = vadd.f32 %v1817_v16, %v2988_v3  ;;  %v1816_v12 = vadd.f32 %v1815_v42, %v1810_v62  ;;  %v1927_v3 = vld [vmem:[#allocation2 + $0xc0] sm:$0xff] }
 0xa73   :  { %v2426_v5 = vpack.c.bf16 %v1928_v24, %v1927_v3 }
 0xa74   :  { %v1824_v55 = vmul.f32 1.442695, %v1819_v18  ;;  %v1818_v47 = vadd.f32 %v1816_v12, %v2974_v28  ;;  %vm1821_vm10 = vcmp.gt.f32.partialorder %v1819_v18, 0.0  ;;  %v1834_v28 = vsub.s32 6, %v2672_v15 }
 0xa75   :  { %2427 = vmatprep.subr.bf16.mxu1 %v2426_v5 }
 0xa76   :  { %2559 = vpow2.f32 %v1824_v55  ;;  %v1822_v9 = vmul.f32 1.442695, %v1818_v47  ;;  %vm1820_vm5 = vcmp.gt.f32.partialorder %v1818_v47, 0.0  ;;  %v1835_v25 = vrot.slane %v2569_v60, %v1834_v28 }
 0xa78   :  { %2561 = vpow2.f32 %v1822_v9 }
 0xa80   :  { %v2560_v37 = vpop.eup %2559 }
 0xa81   :  { %v2078_v20 = vadd.f32 -1.0, %v2560_v37 }
 0xa82   :  { %v2562_v33 = vpop.eup %2561 }
 0xa83   :  { %v2077_v35 = vadd.f32 -1.0, %v2562_v33  ;;  %v1829_v14 = vsel %vm1821_vm10, %v1819_v18, %v2078_v20 }
 0xa85   :  { %v1828_v19 = vsel %vm1820_vm5, %v1818_v47, %v2077_v35 }
 0xa86   :  { %2361 = vmatprep.mubr.msk.f32.mxu1 %vm161_vm3, %v1828_v19 }
 0xa87   :  { %2362 = vmatmul.mubr.msk.f32.vlgmr.msra.gmra.mrb[24].mxu1 %vm161_vm3, %v1829_v14 }
 0xa88   :  { %2429 = vmatpush3.bf16.msra.mxu1 %v2426_v5 }
 0xb5a   :  { %v2363_v61 = vpop.f32.mrb[24].mxu1 }
 0xb5b   :  { %v1914_v59 = vadd.f32 %v2363_v61, %v1835_v25  ;;  %v1908_v43 = vpop.f32.mrb[25].mxu1 }
 0xb5c   :  { %v1909_v0 = vadd.f32 %v1908_v43, %v1835_v25 }
 0xb5d   :  { %v1921_v10 = vmul.f32 1.442695, %v1914_v59  ;;  %vm1918_vm6 = vcmp.gt.f32.partialorder %v1914_v59, 0.0 }
 0xb5e   :  { %v1919_v17 = vmul.f32 1.442695, %v1909_v0  ;;  %vm1917_vm15 = vcmp.gt.f32.partialorder %v1909_v0, 0.0 }
 0xb5f   :  { %2563 = vpow2.f32 %v1921_v10 }
 0xb60   :  { %2565 = vpow2.f32 %v1919_v17 }
 0xb69   :  { %v2564_v31 = vpop.eup %2563 }
 0xb6a   :  { %v2566_v27 = vpop.eup %2565  ;;  %v2082_v13 = vadd.f32 -1.0, %v2564_v31 }
 0xb6b   :  { %v2081_v11 = vadd.f32 -1.0, %v2566_v27 }
 0xb6c   :  { %v1926_v26 = vsel %vm1918_vm6, %v1914_v59, %v2082_v13 }
 0xb6d   :  { %v1925_v6 = vsel %vm1917_vm15, %v1909_v0, %v2081_v11 }
 0xb6e   :  { %2368 = vmatprep.mubr.msk.f32.mxu1 %vm161_vm3, %v1925_v6 }
 0xb6f   :  { %2369 = vmatmul.mubr.msk.f32.vlgmr.msra.gmra.mrb[26].mxu1 %vm161_vm3, %v1926_v26 }
 0xc42   :  { %v2370_v23 = vpop.f32.mrb[26].mxu1 }
 0xc43   :  { %v2011_v40 = vadd.f32 %v2370_v23, %v1932_v46  ;;  %v2005_v39 = vpop.f32.mrb[27].mxu1 }
 0xc44   :  { %v2006_v7 = vadd.f32 %v2005_v39, %v1932_v46 }
 0xc45   :  { %2017 = vst.msk [vmem:[%s3188_s3 + $0x8] sm:$0xf] %vm2016_vm4, %v2011_v40 }
 0xc46   :  { %2015 = vst.msk [vmem:[%s3188_s3] sm:$0xff] %vm2014_vm11, %v2006_v7 }
 0xc47   :  { %2022 = vsyncpa [#allocation3], 1 }

</bundles_post_ra>
